<compile_context>
chip_gen: v7x
topology: tpu7x:2x2x1
jax: 0.10.0
libtpu: 0.0.40
codegen_flags: <defaults>
</compile_context>

<pallas_src>
import functools

import jax
import jax.numpy as jnp
import numpy as np
from jax.experimental import pallas as pl
from jax.experimental.pallas import tpu as pltpu


# ----------------------------------------------------------------------------
# Pallas kernel: one LSTM layer (input_size=1) + Linear on last hidden state
# ----------------------------------------------------------------------------
def lstm_fc_kernel(x_ref,      # (T*B, 1)   f32 VMEM  (time-major, row = t*B + b)
                   w_ih_ref,   # (4, 1, H)  f32 VMEM  per-gate input weights (i,f,g,o)
                   w_hh_ref,   # (4, H, H)  f32 VMEM  per-gate recurrent weights^T
                   b_ref,      # (4, 1, H)  f32 VMEM  per-gate combined bias (b_ih+b_hh)
                   w_fc_ref,   # (H, O)     f32 VMEM  fc1.weight.T
                   b_fc_ref,   # (1, O)     f32 VMEM  fc1.bias
                   out_ref,    # (B, O)     f32 VMEM
                   *, T, B):
    # ---- Prologue: everything here is off the recurrence critical path. ----
    x = x_ref[...]                                    # (T*B, 1)

    # Per-gate recurrent weights, loaded once, lane-aligned (each (H, H)).
    W_i = w_hh_ref[0]
    W_f = w_hh_ref[1]
    W_g = w_hh_ref[2]
    W_o = w_hh_ref[3]

    # Precomputed input projection + combined bias for ALL timesteps,
    # per gate, kept as values (vregs): gx_*[t*B + b, :] = x[b, t]*w_ih_* + b_*
    # (input_size == 1 -> the "input matmul" is a lane-broadcast multiply).
    gx_i = x * w_ih_ref[0] + b_ref[0]                 # (T*B, H)
    gx_f = x * w_ih_ref[1] + b_ref[1]
    gx_g = x * w_ih_ref[2] + b_ref[2]
    gx_o = x * w_ih_ref[3] + b_ref[3]

    # ---- Recurrence: four lane-aligned (B,H)@(H,H) matmuls per step,
    #      4 EUP nonlinearities, VPU combines.  No XLU work on the chain. ----
    h = None   # h0 = c0 = 0 (PyTorch default); step 0 skips the matmuls.
    c = None
    for t in range(T):
        lo = t * B
        if h is None:
            pre_i = gx_i[lo:lo + B]
            pre_g = gx_g[lo:lo + B]
            pre_o = gx_o[lo:lo + B]
            i_g = jax.nn.sigmoid(pre_i)
            g_g = jnp.tanh(pre_g)
            o_g = jax.nn.sigmoid(pre_o)
            c = i_g * g_g                       # f_g * c0 == 0
        else:
            pre_i = gx_i[lo:lo + B] + jnp.dot(h, W_i, preferred_element_type=jnp.float32)
            pre_f = gx_f[lo:lo + B] + jnp.dot(h, W_f, preferred_element_type=jnp.float32)
            pre_g = gx_g[lo:lo + B] + jnp.dot(h, W_g, preferred_element_type=jnp.float32)
            pre_o = gx_o[lo:lo + B] + jnp.dot(h, W_o, preferred_element_type=jnp.float32)
            i_g = jax.nn.sigmoid(pre_i)
            f_g = jax.nn.sigmoid(pre_f)
            g_g = jnp.tanh(pre_g)
            o_g = jax.nn.sigmoid(pre_o)
            c = f_g * c + i_g * g_g
        h = o_g * jnp.tanh(c)

    # ---- fc1 on the last time-step hidden state. ----
    out_ref[...] = (jnp.dot(h, w_fc_ref[...], preferred_element_type=jnp.float32)
                    + b_fc_ref[...])


# ----------------------------------------------------------------------------
# Wrapper (glue): parameter layout transforms + pallas_call
# ----------------------------------------------------------------------------
@jax.jit
def rnn_forward(x, w_ih, w_hh, b_ih, b_hh, w_fc, b_fc):
    """x: (B, T, 1) float32, PyTorch-layout params. Returns (B, output_len)."""
    B, T, _ = x.shape
    H = w_hh.shape[1]
    O = w_fc.shape[0]

    # Time-major, flattened input: row t*B + b holds x[b, t, 0].
    x_tm = jnp.transpose(x, (1, 0, 2)).reshape(T * B, 1).astype(jnp.float32)

    # Per-gate parameter blocks in PyTorch gate order (i, f, g, o); no column
    # permutation needed since each gate is handled lane-aligned in the kernel.
    w_ih_blk = jnp.transpose(w_ih.astype(jnp.float32).reshape(4, H, 1), (0, 2, 1))  # (4,1,H)
    w_hh_blk = jnp.transpose(w_hh.astype(jnp.float32).reshape(4, H, H), (0, 2, 1))  # (4,H,H) = W_g^T
    b_blk = (b_ih + b_hh).astype(jnp.float32).reshape(4, 1, H)                      # (4,1,H)
    w_fc_t = w_fc.T.astype(jnp.float32)                                             # (H, O)
    b_fc_r = b_fc.reshape(1, O).astype(jnp.float32)                                 # (1, O)

    vmem = pl.BlockSpec(memory_space=pltpu.MemorySpace.VMEM)
    return pl.pallas_call(
        functools.partial(lstm_fc_kernel, T=T, B=B),
        out_shape=jax.ShapeDtypeStruct((B, O), jnp.float32),
        in_specs=[vmem] * 6,
        out_specs=vmem,
    )(x_tm, w_ih_blk, w_hh_blk, b_blk, w_fc_t, b_fc_r)


# ----------------------------------------------------------------------------
# Pure-JAX reference (mirrors torch.nn.LSTM + Linear semantics)
# ----------------------------------------------------------------------------
def rnn_forward_ref(x, w_ih, w_hh, b_ih, b_hh, w_fc, b_fc):
    B, T, _ = x.shape
    H = w_hh.shape[1]
    h = jnp.zeros((B, H), jnp.float32)
    c = jnp.zeros((B, H), jnp.float32)
    for t in range(T):
        gates = x[:, t, :] @ w_ih.T + b_ih + h @ w_hh.T + b_hh
        i, f, g, o = jnp.split(gates, 4, axis=1)
        i, f, g, o = jax.nn.sigmoid(i), jax.nn.sigmoid(f), jnp.tanh(g), jax.nn.sigmoid(o)
        c = f * c + i * g
        h = o * jnp.tanh(c)
    return h @ w_fc.T + b_fc


if __name__ == "__main__":
    # Small shapes consistent with the module: batch=4, seq=8, input_size=1,
    # hidden_unit=32, output_len=5.
    B, T, H, O = 4, 8, 32, 5

    key = jax.random.PRNGKey(0)
    ks = jax.random.split(key, 8)

    k_lstm = 1.0 / np.sqrt(H)   # PyTorch LSTM default init: U(-1/sqrt(H), 1/sqrt(H))
    k_fc = 1.0 / np.sqrt(H)     # PyTorch Linear default init: U(-1/sqrt(in), 1/sqrt(in))

    w_ih = jax.random.uniform(ks[0], (4 * H, 1), jnp.float32, -k_lstm, k_lstm)
    w_hh = jax.random.uniform(ks[1], (4 * H, H), jnp.float32, -k_lstm, k_lstm)
    b_ih = jax.random.uniform(ks[2], (4 * H,), jnp.float32, -k_lstm, k_lstm)
    b_hh = jax.random.uniform(ks[3], (4 * H,), jnp.float32, -k_lstm, k_lstm)
    w_fc = jax.random.uniform(ks[4], (O, H), jnp.float32, -k_fc, k_fc)
    b_fc = jax.random.uniform(ks[5], (O,), jnp.float32, -k_fc, k_fc)

    x = jax.random.normal(ks[6], (B, T, 1), jnp.float32)

    out = rnn_forward(x, w_ih, w_hh, b_ih, b_hh, w_fc, b_fc)
    out = jax.block_until_ready(out)

    ref = rnn_forward_ref(x, w_ih, w_hh, b_ih, b_hh, w_fc, b_fc)
    np.testing.assert_allclose(np.asarray(out), np.asarray(ref), rtol=1e-4, atol=1e-4)

    print("KERNEL_OK")
</pallas_src>

<mosaic_0001>
module attributes {stable_mosaic.version = 11 : i64} {
  func.func @lstm_fc_kernel(%arg0: memref<32x1xf32, #tpu.memory_space<vmem>>, %arg1: memref<4x1x32xf32, #tpu.memory_space<vmem>>, %arg2: memref<4x32x32xf32, #tpu.memory_space<vmem>>, %arg3: memref<4x1x32xf32, #tpu.memory_space<vmem>>, %arg4: memref<32x5xf32, #tpu.memory_space<vmem>>, %arg5: memref<1x5xf32, #tpu.memory_space<vmem>>, %arg6: memref<4x5xf32, #tpu.memory_space<vmem>>) attributes {dimension_semantics = [], scalar_prefetch = 0 : i64, scratch_operands = 0 : i64, tpu.core_type = #tpu.core_type<tc>} {
    %c0 = arith.constant 0 : index
    %c0_0 = arith.constant 0 : index
    %0 = vector.load %arg0[%c0, %c0_0] : memref<32x1xf32, #tpu.memory_space<vmem>>, vector<32x1xf32>
    %c0_1 = arith.constant 0 : index
    %c0_2 = arith.constant 0 : index
    %c0_3 = arith.constant 0 : index
    %1 = vector.load %arg2[%c0_1, %c0_2, %c0_3] : memref<4x32x32xf32, #tpu.memory_space<vmem>>, vector<1x32x32xf32>
    %2 = vector.shape_cast %1 : vector<1x32x32xf32> to vector<32x32xf32>
    %c1 = arith.constant 1 : index
    %c0_4 = arith.constant 0 : index
    %c0_5 = arith.constant 0 : index
    %3 = vector.load %arg2[%c1, %c0_4, %c0_5] : memref<4x32x32xf32, #tpu.memory_space<vmem>>, vector<1x32x32xf32>
    %4 = vector.shape_cast %3 : vector<1x32x32xf32> to vector<32x32xf32>
    %c2 = arith.constant 2 : index
    %c0_6 = arith.constant 0 : index
    %c0_7 = arith.constant 0 : index
    %5 = vector.load %arg2[%c2, %c0_6, %c0_7] : memref<4x32x32xf32, #tpu.memory_space<vmem>>, vector<1x32x32xf32>
    %6 = vector.shape_cast %5 : vector<1x32x32xf32> to vector<32x32xf32>
    %c3 = arith.constant 3 : index
    %c0_8 = arith.constant 0 : index
    %c0_9 = arith.constant 0 : index
    %7 = vector.load %arg2[%c3, %c0_8, %c0_9] : memref<4x32x32xf32, #tpu.memory_space<vmem>>, vector<1x32x32xf32>
    %8 = vector.shape_cast %7 : vector<1x32x32xf32> to vector<32x32xf32>
    %c0_10 = arith.constant 0 : index
    %c0_11 = arith.constant 0 : index
    %c0_12 = arith.constant 0 : index
    %9 = vector.load %arg1[%c0_10, %c0_11, %c0_12] : memref<4x1x32xf32, #tpu.memory_space<vmem>>, vector<1x1x32xf32>
    %10 = vector.shape_cast %9 : vector<1x1x32xf32> to vector<1x32xf32>
    %11 = vector.broadcast %0 : vector<32x1xf32> to vector<32x32xf32>
    %12 = vector.broadcast %10 : vector<1x32xf32> to vector<32x32xf32>
    %13 = arith.mulf %11, %12 : vector<32x32xf32>
    %c0_13 = arith.constant 0 : index
    %c0_14 = arith.constant 0 : index
    %c0_15 = arith.constant 0 : index
    %14 = vector.load %arg3[%c0_13, %c0_14, %c0_15] : memref<4x1x32xf32, #tpu.memory_space<vmem>>, vector<1x1x32xf32>
    %15 = vector.shape_cast %14 : vector<1x1x32xf32> to vector<1x32xf32>
    %16 = vector.broadcast %15 : vector<1x32xf32> to vector<32x32xf32>
    %17 = arith.addf %13, %16 : vector<32x32xf32>
    %c1_16 = arith.constant 1 : index
    %c0_17 = arith.constant 0 : index
    %c0_18 = arith.constant 0 : index
    %18 = vector.load %arg1[%c1_16, %c0_17, %c0_18] : memref<4x1x32xf32, #tpu.memory_space<vmem>>, vector<1x1x32xf32>
    %19 = vector.shape_cast %18 : vector<1x1x32xf32> to vector<1x32xf32>
    %20 = vector.broadcast %0 : vector<32x1xf32> to vector<32x32xf32>
    %21 = vector.broadcast %19 : vector<1x32xf32> to vector<32x32xf32>
    %22 = arith.mulf %20, %21 : vector<32x32xf32>
    %c1_19 = arith.constant 1 : index
    %c0_20 = arith.constant 0 : index
    %c0_21 = arith.constant 0 : index
    %23 = vector.load %arg3[%c1_19, %c0_20, %c0_21] : memref<4x1x32xf32, #tpu.memory_space<vmem>>, vector<1x1x32xf32>
    %24 = vector.shape_cast %23 : vector<1x1x32xf32> to vector<1x32xf32>
    %25 = vector.broadcast %24 : vector<1x32xf32> to vector<32x32xf32>
    %26 = arith.addf %22, %25 : vector<32x32xf32>
    %c2_22 = arith.constant 2 : index
    %c0_23 = arith.constant 0 : index
    %c0_24 = arith.constant 0 : index
    %27 = vector.load %arg1[%c2_22, %c0_23, %c0_24] : memref<4x1x32xf32, #tpu.memory_space<vmem>>, vector<1x1x32xf32>
    %28 = vector.shape_cast %27 : vector<1x1x32xf32> to vector<1x32xf32>
    %29 = vector.broadcast %0 : vector<32x1xf32> to vector<32x32xf32>
    %30 = vector.broadcast %28 : vector<1x32xf32> to vector<32x32xf32>
    %31 = arith.mulf %29, %30 : vector<32x32xf32>
    %c2_25 = arith.constant 2 : index
    %c0_26 = arith.constant 0 : index
    %c0_27 = arith.constant 0 : index
    %32 = vector.load %arg3[%c2_25, %c0_26, %c0_27] : memref<4x1x32xf32, #tpu.memory_space<vmem>>, vector<1x1x32xf32>
    %33 = vector.shape_cast %32 : vector<1x1x32xf32> to vector<1x32xf32>
    %34 = vector.broadcast %33 : vector<1x32xf32> to vector<32x32xf32>
    %35 = arith.addf %31, %34 : vector<32x32xf32>
    %c3_28 = arith.constant 3 : index
    %c0_29 = arith.constant 0 : index
    %c0_30 = arith.constant 0 : index
    %36 = vector.load %arg1[%c3_28, %c0_29, %c0_30] : memref<4x1x32xf32, #tpu.memory_space<vmem>>, vector<1x1x32xf32>
    %37 = vector.shape_cast %36 : vector<1x1x32xf32> to vector<1x32xf32>
    %38 = vector.broadcast %0 : vector<32x1xf32> to vector<32x32xf32>
    %39 = vector.broadcast %37 : vector<1x32xf32> to vector<32x32xf32>
    %40 = arith.mulf %38, %39 : vector<32x32xf32>
    %c3_31 = arith.constant 3 : index
    %c0_32 = arith.constant 0 : index
    %c0_33 = arith.constant 0 : index
    %41 = vector.load %arg3[%c3_31, %c0_32, %c0_33] : memref<4x1x32xf32, #tpu.memory_space<vmem>>, vector<1x1x32xf32>
    %42 = vector.shape_cast %41 : vector<1x1x32xf32> to vector<1x32xf32>
    %43 = vector.broadcast %42 : vector<1x32xf32> to vector<32x32xf32>
    %44 = arith.addf %40, %43 : vector<32x32xf32>
    %45 = vector.extract_strided_slice %17 {offsets = [0, 0], sizes = [4, 32], strides = [1, 1]} : vector<32x32xf32> to vector<4x32xf32>
    %46 = vector.extract_strided_slice %35 {offsets = [0, 0], sizes = [4, 32], strides = [1, 1]} : vector<32x32xf32> to vector<4x32xf32>
    %47 = vector.extract_strided_slice %44 {offsets = [0, 0], sizes = [4, 32], strides = [1, 1]} : vector<32x32xf32> to vector<4x32xf32>
    %48 = arith.negf %45 : vector<4x32xf32>
    %49 = math.exp %48 : vector<4x32xf32>
    %cst = arith.constant 1.000000e+00 : f32
    %50 = vector.broadcast %cst : f32 to vector<4x32xf32>
    %51 = arith.addf %50, %49 : vector<4x32xf32>
    %52 = arith.divf %50, %51 : vector<4x32xf32>
    %53 = math.tanh %46 : vector<4x32xf32>
    %54 = arith.negf %47 : vector<4x32xf32>
    %55 = math.exp %54 : vector<4x32xf32>
    %cst_34 = arith.constant 1.000000e+00 : f32
    %56 = vector.broadcast %cst_34 : f32 to vector<4x32xf32>
    %57 = arith.addf %56, %55 : vector<4x32xf32>
    %58 = arith.divf %56, %57 : vector<4x32xf32>
    %59 = arith.mulf %52, %53 : vector<4x32xf32>
    %60 = math.tanh %59 : vector<4x32xf32>
    %61 = arith.mulf %58, %60 : vector<4x32xf32>
    %62 = vector.extract_strided_slice %17 {offsets = [4, 0], sizes = [4, 32], strides = [1, 1]} : vector<32x32xf32> to vector<4x32xf32>
    %cst_35 = arith.constant dense<0.000000e+00> : vector<4x32xf32>
    %63 = tpu.matmul %61, %2, %cst_35 {dimension_numbers = #tpu.dot_dimension_numbers<[1], [0], [0], [1], [0, 0, 1, 1], [], []>} : vector<4x32xf32>, vector<32x32xf32>, vector<4x32xf32> -> vector<4x32xf32>
    %64 = arith.addf %62, %63 : vector<4x32xf32>
    %65 = vector.extract_strided_slice %26 {offsets = [4, 0], sizes = [4, 32], strides = [1, 1]} : vector<32x32xf32> to vector<4x32xf32>
    %cst_36 = arith.constant dense<0.000000e+00> : vector<4x32xf32>
    %66 = tpu.matmul %61, %4, %cst_36 {dimension_numbers = #tpu.dot_dimension_numbers<[1], [0], [0], [1], [0, 0, 1, 1], [], []>} : vector<4x32xf32>, vector<32x32xf32>, vector<4x32xf32> -> vector<4x32xf32>
    %67 = arith.addf %65, %66 : vector<4x32xf32>
    %68 = vector.extract_strided_slice %35 {offsets = [4, 0], sizes = [4, 32], strides = [1, 1]} : vector<32x32xf32> to vector<4x32xf32>
    %cst_37 = arith.constant dense<0.000000e+00> : vector<4x32xf32>
    %69 = tpu.matmul %61, %6, %cst_37 {dimension_numbers = #tpu.dot_dimension_numbers<[1], [0], [0], [1], [0, 0, 1, 1], [], []>} : vector<4x32xf32>, vector<32x32xf32>, vector<4x32xf32> -> vector<4x32xf32>
    %70 = arith.addf %68, %69 : vector<4x32xf32>
    %71 = vector.extract_strided_slice %44 {offsets = [4, 0], sizes = [4, 32], strides = [1, 1]} : vector<32x32xf32> to vector<4x32xf32>
    %cst_38 = arith.constant dense<0.000000e+00> : vector<4x32xf32>
    %72 = tpu.matmul %61, %8, %cst_38 {dimension_numbers = #tpu.dot_dimension_numbers<[1], [0], [0], [1], [0, 0, 1, 1], [], []>} : vector<4x32xf32>, vector<32x32xf32>, vector<4x32xf32> -> vector<4x32xf32>
    %73 = arith.addf %71, %72 : vector<4x32xf32>
    %74 = arith.negf %64 : vector<4x32xf32>
    %75 = math.exp %74 : vector<4x32xf32>
    %cst_39 = arith.constant 1.000000e+00 : f32
    %76 = vector.broadcast %cst_39 : f32 to vector<4x32xf32>
    %77 = arith.addf %76, %75 : vector<4x32xf32>
    %78 = arith.divf %76, %77 : vector<4x32xf32>
    %79 = arith.negf %67 : vector<4x32xf32>
    %80 = math.exp %79 : vector<4x32xf32>
    %cst_40 = arith.constant 1.000000e+00 : f32
    %81 = vector.broadcast %cst_40 : f32 to vector<4x32xf32>
    %82 = arith.addf %81, %80 : vector<4x32xf32>
    %83 = arith.divf %81, %82 : vector<4x32xf32>
    %84 = math.tanh %70 : vector<4x32xf32>
    %85 = arith.negf %73 : vector<4x32xf32>
    %86 = math.exp %85 : vector<4x32xf32>
    %cst_41 = arith.constant 1.000000e+00 : f32
    %87 = vector.broadcast %cst_41 : f32 to vector<4x32xf32>
    %88 = arith.addf %87, %86 : vector<4x32xf32>
    %89 = arith.divf %87, %88 : vector<4x32xf32>
    %90 = arith.mulf %83, %59 : vector<4x32xf32>
    %91 = arith.mulf %78, %84 : vector<4x32xf32>
    %92 = arith.addf %90, %91 : vector<4x32xf32>
    %93 = math.tanh %92 : vector<4x32xf32>
    %94 = arith.mulf %89, %93 : vector<4x32xf32>
    %95 = vector.extract_strided_slice %17 {offsets = [8, 0], sizes = [4, 32], strides = [1, 1]} : vector<32x32xf32> to vector<4x32xf32>
    %cst_42 = arith.constant dense<0.000000e+00> : vector<4x32xf32>
    %96 = tpu.matmul %94, %2, %cst_42 {dimension_numbers = #tpu.dot_dimension_numbers<[1], [0], [0], [1], [0, 0, 1, 1], [], []>} : vector<4x32xf32>, vector<32x32xf32>, vector<4x32xf32> -> vector<4x32xf32>
    %97 = arith.addf %95, %96 : vector<4x32xf32>
    %98 = vector.extract_strided_slice %26 {offsets = [8, 0], sizes = [4, 32], strides = [1, 1]} : vector<32x32xf32> to vector<4x32xf32>
    %cst_43 = arith.constant dense<0.000000e+00> : vector<4x32xf32>
    %99 = tpu.matmul %94, %4, %cst_43 {dimension_numbers = #tpu.dot_dimension_numbers<[1], [0], [0], [1], [0, 0, 1, 1], [], []>} : vector<4x32xf32>, vector<32x32xf32>, vector<4x32xf32> -> vector<4x32xf32>
    %100 = arith.addf %98, %99 : vector<4x32xf32>
    %101 = vector.extract_strided_slice %35 {offsets = [8, 0], sizes = [4, 32], strides = [1, 1]} : vector<32x32xf32> to vector<4x32xf32>
    %cst_44 = arith.constant dense<0.000000e+00> : vector<4x32xf32>
    %102 = tpu.matmul %94, %6, %cst_44 {dimension_numbers = #tpu.dot_dimension_numbers<[1], [0], [0], [1], [0, 0, 1, 1], [], []>} : vector<4x32xf32>, vector<32x32xf32>, vector<4x32xf32> -> vector<4x32xf32>
    %103 = arith.addf %101, %102 : vector<4x32xf32>
    %104 = vector.extract_strided_slice %44 {offsets = [8, 0], sizes = [4, 32], strides = [1, 1]} : vector<32x32xf32> to vector<4x32xf32>
    %cst_45 = arith.constant dense<0.000000e+00> : vector<4x32xf32>
    %105 = tpu.matmul %94, %8, %cst_45 {dimension_numbers = #tpu.dot_dimension_numbers<[1], [0], [0], [1], [0, 0, 1, 1], [], []>} : vector<4x32xf32>, vector<32x32xf32>, vector<4x32xf32> -> vector<4x32xf32>
    %106 = arith.addf %104, %105 : vector<4x32xf32>
    %107 = arith.negf %97 : vector<4x32xf32>
    %108 = math.exp %107 : vector<4x32xf32>
    %cst_46 = arith.constant 1.000000e+00 : f32
    %109 = vector.broadcast %cst_46 : f32 to vector<4x32xf32>
    %110 = arith.addf %109, %108 : vector<4x32xf32>
    %111 = arith.divf %109, %110 : vector<4x32xf32>
    %112 = arith.negf %100 : vector<4x32xf32>
    %113 = math.exp %112 : vector<4x32xf32>
    %cst_47 = arith.constant 1.000000e+00 : f32
    %114 = vector.broadcast %cst_47 : f32 to vector<4x32xf32>
    %115 = arith.addf %114, %113 : vector<4x32xf32>
    %116 = arith.divf %114, %115 : vector<4x32xf32>
    %117 = math.tanh %103 : vector<4x32xf32>
    %118 = arith.negf %106 : vector<4x32xf32>
    %119 = math.exp %118 : vector<4x32xf32>
    %cst_48 = arith.constant 1.000000e+00 : f32
    %120 = vector.broadcast %cst_48 : f32 to vector<4x32xf32>
    %121 = arith.addf %120, %119 : vector<4x32xf32>
    %122 = arith.divf %120, %121 : vector<4x32xf32>
    %123 = arith.mulf %116, %92 : vector<4x32xf32>
    %124 = arith.mulf %111, %117 : vector<4x32xf32>
    %125 = arith.addf %123, %124 : vector<4x32xf32>
    %126 = math.tanh %125 : vector<4x32xf32>
    %127 = arith.mulf %122, %126 : vector<4x32xf32>
    %128 = vector.extract_strided_slice %17 {offsets = [12, 0], sizes = [4, 32], strides = [1, 1]} : vector<32x32xf32> to vector<4x32xf32>
    %cst_49 = arith.constant dense<0.000000e+00> : vector<4x32xf32>
    %129 = tpu.matmul %127, %2, %cst_49 {dimension_numbers = #tpu.dot_dimension_numbers<[1], [0], [0], [1], [0, 0, 1, 1], [], []>} : vector<4x32xf32>, vector<32x32xf32>, vector<4x32xf32> -> vector<4x32xf32>
    %130 = arith.addf %128, %129 : vector<4x32xf32>
    %131 = vector.extract_strided_slice %26 {offsets = [12, 0], sizes = [4, 32], strides = [1, 1]} : vector<32x32xf32> to vector<4x32xf32>
    %cst_50 = arith.constant dense<0.000000e+00> : vector<4x32xf32>
    %132 = tpu.matmul %127, %4, %cst_50 {dimension_numbers = #tpu.dot_dimension_numbers<[1], [0], [0], [1], [0, 0, 1, 1], [], []>} : vector<4x32xf32>, vector<32x32xf32>, vector<4x32xf32> -> vector<4x32xf32>
    %133 = arith.addf %131, %132 : vector<4x32xf32>
    %134 = vector.extract_strided_slice %35 {offsets = [12, 0], sizes = [4, 32], strides = [1, 1]} : vector<32x32xf32> to vector<4x32xf32>
    %cst_51 = arith.constant dense<0.000000e+00> : vector<4x32xf32>
    %135 = tpu.matmul %127, %6, %cst_51 {dimension_numbers = #tpu.dot_dimension_numbers<[1], [0], [0], [1], [0, 0, 1, 1], [], []>} : vector<4x32xf32>, vector<32x32xf32>, vector<4x32xf32> -> vector<4x32xf32>
    %136 = arith.addf %134, %135 : vector<4x32xf32>
    %137 = vector.extract_strided_slice %44 {offsets = [12, 0], sizes = [4, 32], strides = [1, 1]} : vector<32x32xf32> to vector<4x32xf32>
    %cst_52 = arith.constant dense<0.000000e+00> : vector<4x32xf32>
    %138 = tpu.matmul %127, %8, %cst_52 {dimension_numbers = #tpu.dot_dimension_numbers<[1], [0], [0], [1], [0, 0, 1, 1], [], []>} : vector<4x32xf32>, vector<32x32xf32>, vector<4x32xf32> -> vector<4x32xf32>
    %139 = arith.addf %137, %138 : vector<4x32xf32>
    %140 = arith.negf %130 : vector<4x32xf32>
    %141 = math.exp %140 : vector<4x32xf32>
    %cst_53 = arith.constant 1.000000e+00 : f32
    %142 = vector.broadcast %cst_53 : f32 to vector<4x32xf32>
    %143 = arith.addf %142, %141 : vector<4x32xf32>
    %144 = arith.divf %142, %143 : vector<4x32xf32>
    %145 = arith.negf %133 : vector<4x32xf32>
    %146 = math.exp %145 : vector<4x32xf32>
    %cst_54 = arith.constant 1.000000e+00 : f32
    %147 = vector.broadcast %cst_54 : f32 to vector<4x32xf32>
    %148 = arith.addf %147, %146 : vector<4x32xf32>
    %149 = arith.divf %147, %148 : vector<4x32xf32>
    %150 = math.tanh %136 : vector<4x32xf32>
    %151 = arith.negf %139 : vector<4x32xf32>
    %152 = math.exp %151 : vector<4x32xf32>
    %cst_55 = arith.constant 1.000000e+00 : f32
    %153 = vector.broadcast %cst_55 : f32 to vector<4x32xf32>
    %154 = arith.addf %153, %152 : vector<4x32xf32>
    %155 = arith.divf %153, %154 : vector<4x32xf32>
    %156 = arith.mulf %149, %125 : vector<4x32xf32>
    %157 = arith.mulf %144, %150 : vector<4x32xf32>
    %158 = arith.addf %156, %157 : vector<4x32xf32>
    %159 = math.tanh %158 : vector<4x32xf32>
    %160 = arith.mulf %155, %159 : vector<4x32xf32>
    %161 = vector.extract_strided_slice %17 {offsets = [16, 0], sizes = [4, 32], strides = [1, 1]} : vector<32x32xf32> to vector<4x32xf32>
    %cst_56 = arith.constant dense<0.000000e+00> : vector<4x32xf32>
    %162 = tpu.matmul %160, %2, %cst_56 {dimension_numbers = #tpu.dot_dimension_numbers<[1], [0], [0], [1], [0, 0, 1, 1], [], []>} : vector<4x32xf32>, vector<32x32xf32>, vector<4x32xf32> -> vector<4x32xf32>
    %163 = arith.addf %161, %162 : vector<4x32xf32>
    %164 = vector.extract_strided_slice %26 {offsets = [16, 0], sizes = [4, 32], strides = [1, 1]} : vector<32x32xf32> to vector<4x32xf32>
    %cst_57 = arith.constant dense<0.000000e+00> : vector<4x32xf32>
    %165 = tpu.matmul %160, %4, %cst_57 {dimension_numbers = #tpu.dot_dimension_numbers<[1], [0], [0], [1], [0, 0, 1, 1], [], []>} : vector<4x32xf32>, vector<32x32xf32>, vector<4x32xf32> -> vector<4x32xf32>
    %166 = arith.addf %164, %165 : vector<4x32xf32>
    %167 = vector.extract_strided_slice %35 {offsets = [16, 0], sizes = [4, 32], strides = [1, 1]} : vector<32x32xf32> to vector<4x32xf32>
    %cst_58 = arith.constant dense<0.000000e+00> : vector<4x32xf32>
    %168 = tpu.matmul %160, %6, %cst_58 {dimension_numbers = #tpu.dot_dimension_numbers<[1], [0], [0], [1], [0, 0, 1, 1], [], []>} : vector<4x32xf32>, vector<32x32xf32>, vector<4x32xf32> -> vector<4x32xf32>
    %169 = arith.addf %167, %168 : vector<4x32xf32>
    %170 = vector.extract_strided_slice %44 {offsets = [16, 0], sizes = [4, 32], strides = [1, 1]} : vector<32x32xf32> to vector<4x32xf32>
    %cst_59 = arith.constant dense<0.000000e+00> : vector<4x32xf32>
    %171 = tpu.matmul %160, %8, %cst_59 {dimension_numbers = #tpu.dot_dimension_numbers<[1], [0], [0], [1], [0, 0, 1, 1], [], []>} : vector<4x32xf32>, vector<32x32xf32>, vector<4x32xf32> -> vector<4x32xf32>
    %172 = arith.addf %170, %171 : vector<4x32xf32>
    %173 = arith.negf %163 : vector<4x32xf32>
    %174 = math.exp %173 : vector<4x32xf32>
    %cst_60 = arith.constant 1.000000e+00 : f32
    %175 = vector.broadcast %cst_60 : f32 to vector<4x32xf32>
    %176 = arith.addf %175, %174 : vector<4x32xf32>
    %177 = arith.divf %175, %176 : vector<4x32xf32>
    %178 = arith.negf %166 : vector<4x32xf32>
    %179 = math.exp %178 : vector<4x32xf32>
    %cst_61 = arith.constant 1.000000e+00 : f32
    %180 = vector.broadcast %cst_61 : f32 to vector<4x32xf32>
    %181 = arith.addf %180, %179 : vector<4x32xf32>
    %182 = arith.divf %180, %181 : vector<4x32xf32>
    %183 = math.tanh %169 : vector<4x32xf32>
    %184 = arith.negf %172 : vector<4x32xf32>
    %185 = math.exp %184 : vector<4x32xf32>
    %cst_62 = arith.constant 1.000000e+00 : f32
    %186 = vector.broadcast %cst_62 : f32 to vector<4x32xf32>
    %187 = arith.addf %186, %185 : vector<4x32xf32>
    %188 = arith.divf %186, %187 : vector<4x32xf32>
    %189 = arith.mulf %182, %158 : vector<4x32xf32>
    %190 = arith.mulf %177, %183 : vector<4x32xf32>
    %191 = arith.addf %189, %190 : vector<4x32xf32>
    %192 = math.tanh %191 : vector<4x32xf32>
    %193 = arith.mulf %188, %192 : vector<4x32xf32>
    %194 = vector.extract_strided_slice %17 {offsets = [20, 0], sizes = [4, 32], strides = [1, 1]} : vector<32x32xf32> to vector<4x32xf32>
    %cst_63 = arith.constant dense<0.000000e+00> : vector<4x32xf32>
    %195 = tpu.matmul %193, %2, %cst_63 {dimension_numbers = #tpu.dot_dimension_numbers<[1], [0], [0], [1], [0, 0, 1, 1], [], []>} : vector<4x32xf32>, vector<32x32xf32>, vector<4x32xf32> -> vector<4x32xf32>
    %196 = arith.addf %194, %195 : vector<4x32xf32>
    %197 = vector.extract_strided_slice %26 {offsets = [20, 0], sizes = [4, 32], strides = [1, 1]} : vector<32x32xf32> to vector<4x32xf32>
    %cst_64 = arith.constant dense<0.000000e+00> : vector<4x32xf32>
    %198 = tpu.matmul %193, %4, %cst_64 {dimension_numbers = #tpu.dot_dimension_numbers<[1], [0], [0], [1], [0, 0, 1, 1], [], []>} : vector<4x32xf32>, vector<32x32xf32>, vector<4x32xf32> -> vector<4x32xf32>
    %199 = arith.addf %197, %198 : vector<4x32xf32>
    %200 = vector.extract_strided_slice %35 {offsets = [20, 0], sizes = [4, 32], strides = [1, 1]} : vector<32x32xf32> to vector<4x32xf32>
    %cst_65 = arith.constant dense<0.000000e+00> : vector<4x32xf32>
    %201 = tpu.matmul %193, %6, %cst_65 {dimension_numbers = #tpu.dot_dimension_numbers<[1], [0], [0], [1], [0, 0, 1, 1], [], []>} : vector<4x32xf32>, vector<32x32xf32>, vector<4x32xf32> -> vector<4x32xf32>
    %202 = arith.addf %200, %201 : vector<4x32xf32>
    %203 = vector.extract_strided_slice %44 {offsets = [20, 0], sizes = [4, 32], strides = [1, 1]} : vector<32x32xf32> to vector<4x32xf32>
    %cst_66 = arith.constant dense<0.000000e+00> : vector<4x32xf32>
    %204 = tpu.matmul %193, %8, %cst_66 {dimension_numbers = #tpu.dot_dimension_numbers<[1], [0], [0], [1], [0, 0, 1, 1], [], []>} : vector<4x32xf32>, vector<32x32xf32>, vector<4x32xf32> -> vector<4x32xf32>
    %205 = arith.addf %203, %204 : vector<4x32xf32>
    %206 = arith.negf %196 : vector<4x32xf32>
    %207 = math.exp %206 : vector<4x32xf32>
    %cst_67 = arith.constant 1.000000e+00 : f32
    %208 = vector.broadcast %cst_67 : f32 to vector<4x32xf32>
    %209 = arith.addf %208, %207 : vector<4x32xf32>
    %210 = arith.divf %208, %209 : vector<4x32xf32>
    %211 = arith.negf %199 : vector<4x32xf32>
    %212 = math.exp %211 : vector<4x32xf32>
    %cst_68 = arith.constant 1.000000e+00 : f32
    %213 = vector.broadcast %cst_68 : f32 to vector<4x32xf32>
    %214 = arith.addf %213, %212 : vector<4x32xf32>
    %215 = arith.divf %213, %214 : vector<4x32xf32>
    %216 = math.tanh %202 : vector<4x32xf32>
    %217 = arith.negf %205 : vector<4x32xf32>
    %218 = math.exp %217 : vector<4x32xf32>
    %cst_69 = arith.constant 1.000000e+00 : f32
    %219 = vector.broadcast %cst_69 : f32 to vector<4x32xf32>
    %220 = arith.addf %219, %218 : vector<4x32xf32>
    %221 = arith.divf %219, %220 : vector<4x32xf32>
    %222 = arith.mulf %215, %191 : vector<4x32xf32>
    %223 = arith.mulf %210, %216 : vector<4x32xf32>
    %224 = arith.addf %222, %223 : vector<4x32xf32>
    %225 = math.tanh %224 : vector<4x32xf32>
    %226 = arith.mulf %221, %225 : vector<4x32xf32>
    %227 = vector.extract_strided_slice %17 {offsets = [24, 0], sizes = [4, 32], strides = [1, 1]} : vector<32x32xf32> to vector<4x32xf32>
    %cst_70 = arith.constant dense<0.000000e+00> : vector<4x32xf32>
    %228 = tpu.matmul %226, %2, %cst_70 {dimension_numbers = #tpu.dot_dimension_numbers<[1], [0], [0], [1], [0, 0, 1, 1], [], []>} : vector<4x32xf32>, vector<32x32xf32>, vector<4x32xf32> -> vector<4x32xf32>
    %229 = arith.addf %227, %228 : vector<4x32xf32>
    %230 = vector.extract_strided_slice %26 {offsets = [24, 0], sizes = [4, 32], strides = [1, 1]} : vector<32x32xf32> to vector<4x32xf32>
    %cst_71 = arith.constant dense<0.000000e+00> : vector<4x32xf32>
    %231 = tpu.matmul %226, %4, %cst_71 {dimension_numbers = #tpu.dot_dimension_numbers<[1], [0], [0], [1], [0, 0, 1, 1], [], []>} : vector<4x32xf32>, vector<32x32xf32>, vector<4x32xf32> -> vector<4x32xf32>
    %232 = arith.addf %230, %231 : vector<4x32xf32>
    %233 = vector.extract_strided_slice %35 {offsets = [24, 0], sizes = [4, 32], strides = [1, 1]} : vector<32x32xf32> to vector<4x32xf32>
    %cst_72 = arith.constant dense<0.000000e+00> : vector<4x32xf32>
    %234 = tpu.matmul %226, %6, %cst_72 {dimension_numbers = #tpu.dot_dimension_numbers<[1], [0], [0], [1], [0, 0, 1, 1], [], []>} : vector<4x32xf32>, vector<32x32xf32>, vector<4x32xf32> -> vector<4x32xf32>
    %235 = arith.addf %233, %234 : vector<4x32xf32>
    %236 = vector.extract_strided_slice %44 {offsets = [24, 0], sizes = [4, 32], strides = [1, 1]} : vector<32x32xf32> to vector<4x32xf32>
    %cst_73 = arith.constant dense<0.000000e+00> : vector<4x32xf32>
    %237 = tpu.matmul %226, %8, %cst_73 {dimension_numbers = #tpu.dot_dimension_numbers<[1], [0], [0], [1], [0, 0, 1, 1], [], []>} : vector<4x32xf32>, vector<32x32xf32>, vector<4x32xf32> -> vector<4x32xf32>
    %238 = arith.addf %236, %237 : vector<4x32xf32>
    %239 = arith.negf %229 : vector<4x32xf32>
    %240 = math.exp %239 : vector<4x32xf32>
    %cst_74 = arith.constant 1.000000e+00 : f32
    %241 = vector.broadcast %cst_74 : f32 to vector<4x32xf32>
    %242 = arith.addf %241, %240 : vector<4x32xf32>
    %243 = arith.divf %241, %242 : vector<4x32xf32>
    %244 = arith.negf %232 : vector<4x32xf32>
    %245 = math.exp %244 : vector<4x32xf32>
    %cst_75 = arith.constant 1.000000e+00 : f32
    %246 = vector.broadcast %cst_75 : f32 to vector<4x32xf32>
    %247 = arith.addf %246, %245 : vector<4x32xf32>
    %248 = arith.divf %246, %247 : vector<4x32xf32>
    %249 = math.tanh %235 : vector<4x32xf32>
    %250 = arith.negf %238 : vector<4x32xf32>
    %251 = math.exp %250 : vector<4x32xf32>
    %cst_76 = arith.constant 1.000000e+00 : f32
    %252 = vector.broadcast %cst_76 : f32 to vector<4x32xf32>
    %253 = arith.addf %252, %251 : vector<4x32xf32>
    %254 = arith.divf %252, %253 : vector<4x32xf32>
    %255 = arith.mulf %248, %224 : vector<4x32xf32>
    %256 = arith.mulf %243, %249 : vector<4x32xf32>
    %257 = arith.addf %255, %256 : vector<4x32xf32>
    %258 = math.tanh %257 : vector<4x32xf32>
    %259 = arith.mulf %254, %258 : vector<4x32xf32>
    %260 = vector.extract_strided_slice %17 {offsets = [28, 0], sizes = [4, 32], strides = [1, 1]} : vector<32x32xf32> to vector<4x32xf32>
    %cst_77 = arith.constant dense<0.000000e+00> : vector<4x32xf32>
    %261 = tpu.matmul %259, %2, %cst_77 {dimension_numbers = #tpu.dot_dimension_numbers<[1], [0], [0], [1], [0, 0, 1, 1], [], []>} : vector<4x32xf32>, vector<32x32xf32>, vector<4x32xf32> -> vector<4x32xf32>
    %262 = arith.addf %260, %261 : vector<4x32xf32>
    %263 = vector.extract_strided_slice %26 {offsets = [28, 0], sizes = [4, 32], strides = [1, 1]} : vector<32x32xf32> to vector<4x32xf32>
    %cst_78 = arith.constant dense<0.000000e+00> : vector<4x32xf32>
    %264 = tpu.matmul %259, %4, %cst_78 {dimension_numbers = #tpu.dot_dimension_numbers<[1], [0], [0], [1], [0, 0, 1, 1], [], []>} : vector<4x32xf32>, vector<32x32xf32>, vector<4x32xf32> -> vector<4x32xf32>
    %265 = arith.addf %263, %264 : vector<4x32xf32>
    %266 = vector.extract_strided_slice %35 {offsets = [28, 0], sizes = [4, 32], strides = [1, 1]} : vector<32x32xf32> to vector<4x32xf32>
    %cst_79 = arith.constant dense<0.000000e+00> : vector<4x32xf32>
    %267 = tpu.matmul %259, %6, %cst_79 {dimension_numbers = #tpu.dot_dimension_numbers<[1], [0], [0], [1], [0, 0, 1, 1], [], []>} : vector<4x32xf32>, vector<32x32xf32>, vector<4x32xf32> -> vector<4x32xf32>
    %268 = arith.addf %266, %267 : vector<4x32xf32>
    %269 = vector.extract_strided_slice %44 {offsets = [28, 0], sizes = [4, 32], strides = [1, 1]} : vector<32x32xf32> to vector<4x32xf32>
    %cst_80 = arith.constant dense<0.000000e+00> : vector<4x32xf32>
    %270 = tpu.matmul %259, %8, %cst_80 {dimension_numbers = #tpu.dot_dimension_numbers<[1], [0], [0], [1], [0, 0, 1, 1], [], []>} : vector<4x32xf32>, vector<32x32xf32>, vector<4x32xf32> -> vector<4x32xf32>
    %271 = arith.addf %269, %270 : vector<4x32xf32>
    %272 = arith.negf %262 : vector<4x32xf32>
    %273 = math.exp %272 : vector<4x32xf32>
    %cst_81 = arith.constant 1.000000e+00 : f32
    %274 = vector.broadcast %cst_81 : f32 to vector<4x32xf32>
    %275 = arith.addf %274, %273 : vector<4x32xf32>
    %276 = arith.divf %274, %275 : vector<4x32xf32>
    %277 = arith.negf %265 : vector<4x32xf32>
    %278 = math.exp %277 : vector<4x32xf32>
    %cst_82 = arith.constant 1.000000e+00 : f32
    %279 = vector.broadcast %cst_82 : f32 to vector<4x32xf32>
    %280 = arith.addf %279, %278 : vector<4x32xf32>
    %281 = arith.divf %279, %280 : vector<4x32xf32>
    %282 = math.tanh %268 : vector<4x32xf32>
    %283 = arith.negf %271 : vector<4x32xf32>
    %284 = math.exp %283 : vector<4x32xf32>
    %cst_83 = arith.constant 1.000000e+00 : f32
    %285 = vector.broadcast %cst_83 : f32 to vector<4x32xf32>
    %286 = arith.addf %285, %284 : vector<4x32xf32>
    %287 = arith.divf %285, %286 : vector<4x32xf32>
    %288 = arith.mulf %281, %257 : vector<4x32xf32>
    %289 = arith.mulf %276, %282 : vector<4x32xf32>
    %290 = arith.addf %288, %289 : vector<4x32xf32>
    %291 = math.tanh %290 : vector<4x32xf32>
    %292 = arith.mulf %287, %291 : vector<4x32xf32>
    %c0_84 = arith.constant 0 : index
    %c0_85 = arith.constant 0 : index
    %293 = vector.load %arg4[%c0_84, %c0_85] : memref<32x5xf32, #tpu.memory_space<vmem>>, vector<32x5xf32>
    %cst_86 = arith.constant dense<0.000000e+00> : vector<4x5xf32>
    %294 = tpu.matmul %292, %293, %cst_86 {dimension_numbers = #tpu.dot_dimension_numbers<[1], [0], [0], [1], [0, 0, 1, 1], [], []>} : vector<4x32xf32>, vector<32x5xf32>, vector<4x5xf32> -> vector<4x5xf32>
    %c0_87 = arith.constant 0 : index
    %c0_88 = arith.constant 0 : index
    %295 = vector.load %arg5[%c0_87, %c0_88] : memref<1x5xf32, #tpu.memory_space<vmem>>, vector<1x5xf32>
    %296 = vector.broadcast %295 : vector<1x5xf32> to vector<4x5xf32>
    %297 = arith.addf %294, %296 : vector<4x5xf32>
    %c0_89 = arith.constant 0 : index
    %c0_90 = arith.constant 0 : index
    %298 = vector.load %arg6[%c0_89, %c0_90] : memref<4x5xf32, #tpu.memory_space<vmem>>, vector<4x5xf32>
    tpu.vector_store %arg6[%c0_89, %c0_90], %297 {strides = array<i32>} : memref<4x5xf32, #tpu.memory_space<vmem>>, vector<4x5xf32>,
    return
  }
}

</mosaic_0001>

<bundles_post_ra>
// kernel: rnn_forward.1
= control target key start
LH: loop header
LB: loop body
LE: loop exit
PB: predicated region body
PF: predicated region fallthrough
CT: control target
= control target key end

     0   :  { %v3400_v1 = vmov 0   ;;  %s3910_s0 = inlined_call_operand.vmem [shape: f32[32,1], index: 0, kind: input, shape index: {}]   ;;  %s3911_s1 = inlined_call_operand.vmem [shape: f32[4,1,32], index: 1, kind: input, shape index: {}]   ;;  %s3912_s2 = inlined_call_operand.vmem [shape: f32[4,32,32], index: 2, kind: input, shape index: {}]   ;;  %s3913_s3 = inlined_call_operand.vmem [shape: f32[4,1,32], index: 3, kind: input, shape index: {}]   ;;  %s3914_s4 = inlined_call_operand.vmem [shape: f32[32,5], index: 4, kind: input, shape index: {}]   ;;  %s3915_s5 = inlined_call_operand.vmem [shape: f32[1,5], index: 5, kind: input, shape index: {}]   ;;  %s3916_s6 = inlined_call_operand.hbm [shape: f32[4,5], index: 6, kind: output, shape index: {}]  }
   0x1   :  { %v24_v0 = vld [vmem:[%s3910_s0] sm:$0xff]  ;;  %3250 = vset.pattern.permute.xlu0 %v3400_v1  ;;  %3251 = vset.pattern.permute.xlu1 %v3400_v1  ;;  %v25_v2 = vld [vmem:[%s3910_s0 + $0x8] sm:$0xff] }
   0x2   :  { %50 = vperm.xlu0 %3250, %v24_v0  }
   0x3   :  { %11 = vsyncpa [#allocation3], 0  ;;  %v28_v3 = vld [vmem:[%s3912_s2] sm:$0xff]  ;;  %v29_v4 = vld [vmem:[%s3912_s2 + $0x8] sm:$0xff]  ;;  %v3401_v6 = vmov 0.0|0.0   ;;  %vm3402_vm0 = vmmov 0  }
   0x4   :  { %v2528_v5 = vld [vmem:[%s3912_s2 + $0x20] sm:$0xff]  ;;  %3071 = vmatprep.subr.bf16.mxu0 %v3401_v6  ;;  %3077 = vmatprep.subr.bf16.mxu1 %v3401_v6  ;;  %v3457_v7 = vpack.c.bf16 %v29_v4, %v28_v3  ;;  %v2529_v8 = vld [vmem:[%s3912_s2 + $0x28] sm:$0xff]  ;;  %v30_v9 = vld [vmem:[%s3912_s2 + $0x10] sm:$0xff]  ;;  %v3403_v14 = vmov 0.0   ;;  %vm177_vm1 = vcmask 261120   ;;  %s3404_s10 = smov [#allocation2]  }
   0x5   :  { %v31_v10 = vld [vmem:[%s3912_s2 + $0x18] sm:$0xff]  ;;  %v3468_v11 = vpack.c.bf16 %v2529_v8, %v2528_v5  ;;  %v2530_v12 = vld [vmem:[%s3912_s2 + $0x30] sm:$0xff]  ;;  %2760 = vmatprep.mubr.msk.f32.mxu0 %vm3402_vm0, %v3403_v14  ;;  %2771 = vmatprep.mubr.msk.f32.mxu1 %vm3402_vm0, %v3403_v14  ;;  %v3495_v17 = vld [vmem:[%s3911_s1] ss:$0 sm:$0xff]  ;;  %s2520_s11 = sshll.u32 %s3404_s10, 4  ;;  %vm2512_vm2 = vcmask 35840   ;;  %s2521_s11 = int_to_ptr.vmem [resolvable:$true] %s2520_s11 }
   0x6   :  { %55 = vperm.xlu0 %3250, %v25_v2   ;;  %v2531_v13 = vld [vmem:[%s3912_s2 + $0x38] sm:$0xff]  ;;  %3073 = vmatpush3.bf16.msra.mxu0 %v3457_v7  ;;  %v3481_v15 = vpack.c.bf16 %v31_v10, %v30_v9  ;;  %v3500_v18 = vld [vmem:[%s3913_s3] ss:$0 sm:$0xff]  ;;  %v3505_v19 = vld [vmem:[%s3911_s1 + $0x3] ss:$0 sm:$0xff]  ;;  %s3376_s12 = scalar_lea.vmem %s2521_s11, 64  ;;  %p3381_p1 = scmp.lt.s32.totalorder %s2521_s11, %s2521_s11 }
   0x7   :  { %3079 = vmatpush3.bf16.msra.mxu1 %v3468_v11  ;;  %3074 = vmatprep.subr.bf16.mxu0 %v3401_v6  ;;  %v3485_v16 = vpack.c.bf16 %v2531_v13, %v2530_v12  ;;  %v3519_v24 = vld [vmem:[%s3913_s3 + $0x3] ss:$0 sm:$0xff]  ;;  %v3528_v27 = vld [vmem:[%s3911_s1 + $0x2] ss:$0 sm:$0xff]  ;;  %v2533_v40 = vld [vmem:[%s3912_s2 + $0x48] sm:$0xff]  ;;  %p3377_p0 = scmp.ne.s32.totalorder %s2521_s11, %s3376_s12  ;;  %p3382_p2 = scmp.lt.s32.totalorder %s3376_s12, %s3376_s12 }
   0x8   :  { %3080 = vmatprep.subr.bf16.mxu1 %v3401_v6  ;;  %v3536_v30 = vld [vmem:[%s3913_s3 + $0x2] ss:$0 sm:$0xff]  ;;  %v2537_v42 = vld [vmem:[%s3912_s2 + $0x68] sm:$0xff]  ;;  %v2534_v47 = vld [vmem:[%s3912_s2 + $0x50] sm:$0xff] }
   0x9   :  { %v2532_v39 = vld [vmem:[%s3912_s2 + $0x40] sm:$0xff]  ;;  %v2535_v49 = vld [vmem:[%s3912_s2 + $0x58] sm:$0xff]  ;;  %v2538_v50 = vld [vmem:[%s3912_s2 + $0x70] sm:$0xff]  ;;  %p3383_p3 = por %p3382_p2, %p3381_p1 }
   0xa   :  { %3076 = vmatpush3.bf16.msra.mxu0 %v3481_v15  ;;  %v2536_v41 = vld [vmem:[%s3912_s2 + $0x60] sm:$0xff]  ;;  %v3557_v45 = vpack.c.bf16 %v2533_v40, %v2532_v39  ;;  %v2539_v51 = vld [vmem:[%s3912_s2 + $0x78] sm:$0xff]  ;;  %v3577_v52 = vpack.c.bf16 %v2535_v49, %v2534_v47 }
   0xb   :  { %3082 = vmatpush3.bf16.msra.mxu1 %v3485_v16  ;;  %3083 = vmatprep.subr.bf16.mxu0 %v3401_v6  ;;  %v3559_v46 = vpack.c.bf16 %v2537_v42, %v2536_v41  ;;  %v3579_v53 = vpack.c.bf16 %v2539_v51, %v2538_v50  ;;  %v3608_v54 = vld [vmem:[%s3911_s1 + $0x1] ss:$0 sm:$0xff]  ;;  %p3384_p4 = pnand %p3383_p3, %p3377_p0 }
   0xc   :  { %3089 = vmatprep.subr.bf16.mxu1 %v3401_v6  ;;  %v3615_v56 = vld [vmem:[%s3913_s3 + $0x1] ss:$0 sm:$0xff] }
  0x81   :  { %v3507_v20 = vpop.permute.xlu0 %50 }
  0x82   :  { %v74_v21 = vmul.f32 %v3495_v17, %v3507_v20  ;;  %v145_v23 = vmul.f32 %v3505_v19, %v3507_v20  ;;  %v121_v28 = vmul.f32 %v3528_v27, %v3507_v20  ;;  %v97_v55 = vmul.f32 %v3608_v54, %v3507_v20 }
  0x84   :  { %v3512_v22 = vadd.f32 %v3500_v18, %v74_v21  ;;  %v3523_v26 = vadd.f32 %v3519_v24, %v145_v23  ;;  %v3539_v31 = vadd.f32 %v3536_v30, %v121_v28  ;;  %v109_v60 = vadd.f32 %v3615_v56, %v97_v55 }
  0x86   :  { %v2554_v25 = vmul.f32 -1.442695, %v3512_v22  ;;  %v2555_v29 = vmul.f32 -1.442695, %v3523_v26 }
  0x88   :  { %3252 = vpow2.f32 %v2554_v25 }
  0x89   :  { %3254 = vpow2.f32 %v2555_v29 }
  0x8a   :  { %3256 = vtanh.f32 %v3539_v31 }
  0x92   :  { %v3253_v32 = vpop.eup %3252 }
  0x93   :  { %v164_v33 = vadd.f32 1.0, %v3253_v32  ;;  %v3255_v34 = vpop.eup %3254 }
  0x94   :  { %v171_v35 = vadd.f32 1.0, %v3255_v34  ;;  %v3257_v36 = vpop.eup %3256 }
  0x95   :  { %3258 = vrcp.f32 %v164_v33 }
  0x96   :  { %3260 = vrcp.f32 %v171_v35 }
  0x9f   :  { %v3259_v37 = vpop.eup %3258 }
  0xa0   :  { %v3542_v38 = vmul.f32 %v3259_v37, %v3257_v36  ;;  %v3261_v43 = vpop.eup %3260 }
  0xa2   :  { %3262 = vtanh.f32 %v3542_v38  ;;  %v497_v34 = vrot.slane %v3542_v38, 4  ;;  %v56_v38 = vpop.permute.xlu0 %55 }
  0xac   :  { %v3263_v44 = vpop.eup %3262 }
  0xad   :  { %v176_v48 = vmul.f32 %v3263_v44, %v3261_v43  ;;  %v75_v43 = vmul.f32 %v3495_v17, %v56_v38  ;;  %v98_v44 = vmul.f32 %v3608_v54, %v56_v38 }
  0xaf   :  { %2761 = vmatmul.mubr.msk.f32.vlgmr.msra.gmra.mrb[0].mxu0 %vm177_vm1, %v176_v48  ;;  %2772 = vmatmul.mubr.msk.f32.vlgmr.msra.gmra.mrb[0].mxu1 %vm177_vm1, %v176_v48  ;;  %v3656_v47 = vadd.f32 %v3500_v18, %v75_v43 }
  0xb0   :  { %3085 = vmatpush3.bf16.msra.mxu0 %v3557_v45  ;;  %3091 = vmatpush3.bf16.msra.mxu1 %v3559_v46 }
  0xb1   :  { %3086 = vmatprep.subr.bf16.mxu0 %v3401_v6  ;;  %3092 = vmatprep.subr.bf16.mxu1 %v3401_v6 }
  0xb2   :  { %2782 = vmatprep.mubr.msk.f32.mxu0 %vm3402_vm0, %v3403_v14  ;;  %2793 = vmatprep.mubr.msk.f32.mxu1 %vm3402_vm0, %v3403_v14 }
  0xb4   :  { %3088 = vmatpush3.bf16.msra.mxu0 %v3577_v52  ;;  %3094 = vmatpush3.bf16.msra.mxu1 %v3579_v53 }
  0xb5   :  { %3095 = vmatprep.subr.bf16.mxu0 %v3401_v6  ;;  %3101 = vmatprep.subr.bf16.mxu1 %v3401_v6 }
  0xb7   :  { %2783 = vmatmul.mubr.msk.f32.vlgmr.msra.gmra.mrb[2].mxu0 %vm177_vm1, %v176_v48  ;;  %2794 = vmatmul.mubr.msk.f32.vlgmr.msra.gmra.mrb[2].mxu1 %vm177_vm1, %v176_v48  ;;  %v3659_v48 = vadd.f32 %v3615_v56, %v98_v44 }
  0xb8   :  { %3097 = vmatpush3.bf16.msra.mxu0 %v3457_v7  ;;  %3103 = vmatpush3.bf16.msra.mxu1 %v3468_v11 }
  0xb9   :  { %3098 = vmatprep.subr.bf16.mxu0 %v3401_v6  ;;  %3104 = vmatprep.subr.bf16.mxu1 %v3401_v6 }
  0xba   :  { %2804 = vmatprep.mubr.msk.f32.mxu0 %vm3402_vm0, %v3403_v14  ;;  %2815 = vmatprep.mubr.msk.f32.mxu1 %vm3402_vm0, %v3403_v14 }
  0xbc   :  { %3100 = vmatpush3.bf16.msra.mxu0 %v3481_v15  ;;  %3106 = vmatpush3.bf16.msra.mxu1 %v3485_v16 }
  0xbd   :  { %3107 = vmatprep.subr.bf16.mxu0 %v3401_v6  ;;  %3113 = vmatprep.subr.bf16.mxu1 %v3401_v6 }
 0x182   :  { %v247_v57 = vpop.f32.mrb[0].mxu0  ;;  %v321_v58 = vpop.f32.mrb[0].mxu1 }
 0x183   :  { %v252_v59 = vrot.slane %v247_v57, 4  ;;  %v326_v61 = vrot.slane %v321_v58, 4  ;;  %v2762_v62 = vpop.f32.mrb[1].mxu0  ;;  %v2773_v63 = vpop.f32.mrb[1].mxu1 }
 0x184   :  { %v122_v62 = vmul.f32 %v3528_v27, %v56_v38 }
 0x185   :  { %v254_v0 = vadd.f32 %v252_v59, %v3512_v22  ;;  %v328_v1 = vadd.f32 %v326_v61, %v109_v60  ;;  %v146_v59 = vmul.f32 %v3505_v19, %v56_v38 }
 0x187   :  { %v2560_v2 = vmul.f32 -1.442695, %v254_v0  ;;  %v2561_v3 = vmul.f32 -1.442695, %v328_v1  ;;  %v3666_v63 = vadd.f32 %v3519_v24, %v146_v59 }
 0x189   :  { %3264 = vpow2.f32 %v2560_v2 }
 0x18a   :  { %3266 = vpow2.f32 %v2561_v3  ;;  %v395_v4 = vpop.f32.mrb[2].mxu0  ;;  %v469_v5 = vpop.f32.mrb[2].mxu1 }
 0x18b   :  { %v474_v8 = vrot.slane %v469_v5, 4  ;;  %v2784_v9 = vpop.f32.mrb[3].mxu0  ;;  %v2795_v10 = vpop.f32.mrb[3].mxu1  ;;  %v400_v12 = vrot.slane %v395_v4, 4  ;;  %v3670_v5 = vadd.f32 %v3536_v30, %v122_v62 }
 0x18d   :  { %v476_v13 = vadd.f32 %v474_v8, %v3523_v26  ;;  %v402_v21 = vadd.f32 %v400_v12, %v3539_v31 }
 0x18f   :  { %v2562_v20 = vmul.f32 -1.442695, %v476_v13 }
 0x191   :  { %3268 = vpow2.f32 %v2562_v20 }
 0x192   :  { %3270 = vtanh.f32 %v402_v21 }
 0x193   :  { %v3265_v23 = vpop.eup %3264 }
 0x194   :  { %v3267_v25 = vpop.eup %3266  ;;  %v480_v28 = vadd.f32 1.0, %v3265_v23 }
 0x195   :  { %v486_v22 = vadd.f32 1.0, %v3267_v25 }
 0x196   :  { %3272 = vrcp.f32 %v480_v28 }
 0x197   :  { %3274 = vrcp.f32 %v486_v22 }
 0x19b   :  { %v3269_v29 = vpop.eup %3268 }
 0x19c   :  { %v3271_v32 = vpop.eup %3270  ;;  %v493_v37 = vadd.f32 1.0, %v3269_v29 }
 0x19e   :  { %3276 = vrcp.f32 %v493_v37 }
 0x1a0   :  { %v3273_v33 = vpop.eup %3272 }
 0x1a1   :  { %v3275_v35 = vpop.eup %3274  ;;  %v500_v36 = vmul.f32 %v3273_v33, %v3271_v32 }
 0x1a2   :  { %v499_v26 = vmul.f32 %v3275_v35, %v497_v34 }
 0x1a4   :  { %v3622_v39 = vadd.f32 %v500_v36, %v499_v26  ;;  %v26_v26 = vld [vmem:[%s3910_s0 + $0x10] sm:$0xff] }
 0x1a5   :  { %60 = vperm.xlu1 %3251, %v26_v26  }
 0x1a6   :  { %3278 = vtanh.f32 %v3622_v39  ;;  %v812_v28 = vrot.slane %v3622_v39, 4  ;;  %v27_v39 = vld [vmem:[%s3910_s0 + $0x18] sm:$0xff] }
 0x1a8   :  { %v3277_v31 = vpop.eup %3276 }
 0x1a9   :  { %65 = vperm.xlu1 %3251, %v27_v39  }
 0x1b0   :  { %v3279_v40 = vpop.eup %3278 }
 0x1b1   :  { %v503_v41 = vmul.f32 %v3279_v40, %v3277_v31 }
 0x1b3   :  { %v505_v42 = vrot.slane %v503_v41, 4 }
 0x1b5   :  { %2805 = vmatmul.mubr.msk.f32.vlgmr.msra.gmra.mrb[4].mxu0 %vm177_vm1, %v505_v42  ;;  %2816 = vmatmul.mubr.msk.f32.vlgmr.msra.gmra.mrb[4].mxu1 %vm177_vm1, %v505_v42 }
 0x1b6   :  { %3109 = vmatpush3.bf16.msra.mxu0 %v3557_v45  ;;  %3115 = vmatpush3.bf16.msra.mxu1 %v3559_v46 }
 0x1b7   :  { %3110 = vmatprep.subr.bf16.mxu0 %v3401_v6  ;;  %3116 = vmatprep.subr.bf16.mxu1 %v3401_v6 }
 0x1b8   :  { %2826 = vmatprep.mubr.msk.f32.mxu0 %vm3402_vm0, %v3403_v14  ;;  %2837 = vmatprep.mubr.msk.f32.mxu1 %vm3402_vm0, %v3403_v14 }
 0x1ba   :  { %3112 = vmatpush3.bf16.msra.mxu0 %v3577_v52  ;;  %3118 = vmatpush3.bf16.msra.mxu1 %v3579_v53 }
 0x1bb   :  { %3119 = vmatprep.subr.bf16.mxu0 %v3401_v6  ;;  %3125 = vmatprep.subr.bf16.mxu1 %v3401_v6 }
 0x1bd   :  { %2827 = vmatmul.mubr.msk.f32.vlgmr.msra.gmra.mrb[6].mxu0 %vm177_vm1, %v505_v42  ;;  %2838 = vmatmul.mubr.msk.f32.vlgmr.msra.gmra.mrb[6].mxu1 %vm177_vm1, %v505_v42 }
 0x1be   :  { %3121 = vmatpush3.bf16.msra.mxu0 %v3457_v7  ;;  %3127 = vmatpush3.bf16.msra.mxu1 %v3468_v11 }
 0x1bf   :  { %3122 = vmatprep.subr.bf16.mxu0 %v3401_v6  ;;  %3128 = vmatprep.subr.bf16.mxu1 %v3401_v6 }
 0x1c0   :  { %2848 = vmatprep.mubr.msk.f32.mxu0 %vm3402_vm0, %v3403_v14  ;;  %2859 = vmatprep.mubr.msk.f32.mxu1 %vm3402_vm0, %v3403_v14 }
 0x1c2   :  { %3124 = vmatpush3.bf16.msra.mxu0 %v3481_v15  ;;  %3130 = vmatpush3.bf16.msra.mxu1 %v3485_v16 }
 0x1c3   :  { %3131 = vmatprep.subr.bf16.mxu0 %v3401_v6  ;;  %3137 = vmatprep.subr.bf16.mxu1 %v3401_v6 }
 0x288   :  { %v574_v49 = vpop.f32.mrb[4].mxu0  ;;  %v645_v50 = vpop.f32.mrb[4].mxu1 }
 0x289   :  { %v578_v51 = vadd.f32 %v574_v49, %v3656_v47  ;;  %v649_v55 = vadd.f32 %v645_v50, %v3659_v48  ;;  %v2806_v57 = vpop.f32.mrb[5].mxu0  ;;  %v2817_v58 = vpop.f32.mrb[5].mxu1 }
 0x28b   :  { %v2567_v60 = vmul.f32 -1.442695, %v578_v51  ;;  %v2568_v61 = vmul.f32 -1.442695, %v649_v55 }
 0x28d   :  { %3280 = vpow2.f32 %v2567_v60 }
 0x28e   :  { %3282 = vpow2.f32 %v2568_v61 }
 0x290   :  { %v716_v0 = vpop.f32.mrb[6].mxu0  ;;  %v787_v1 = vpop.f32.mrb[6].mxu1 }
 0x291   :  { %v791_v2 = vadd.f32 %v787_v1, %v3666_v63  ;;  %v2828_v3 = vpop.f32.mrb[7].mxu0  ;;  %v2839_v4 = vpop.f32.mrb[7].mxu1  ;;  %v720_v9 = vadd.f32 %v716_v0, %v3670_v5 }
 0x293   :  { %v2569_v8 = vmul.f32 -1.442695, %v791_v2 }
 0x295   :  { %3284 = vpow2.f32 %v2569_v8 }
 0x296   :  { %3286 = vtanh.f32 %v720_v9 }
 0x297   :  { %v3281_v10 = vpop.eup %3280 }
 0x298   :  { %v3283_v12 = vpop.eup %3282  ;;  %v795_v13 = vadd.f32 1.0, %v3281_v10 }
 0x299   :  { %v801_v20 = vadd.f32 1.0, %v3283_v12 }
 0x29a   :  { %3288 = vrcp.f32 %v795_v13 }
 0x29b   :  { %3290 = vrcp.f32 %v801_v20 }
 0x29f   :  { %v3285_v21 = vpop.eup %3284 }
 0x2a0   :  { %v3287_v23 = vpop.eup %3286  ;;  %v808_v32 = vadd.f32 1.0, %v3285_v21 }
 0x2a2   :  { %3292 = vrcp.f32 %v808_v32 }
 0x2a4   :  { %v3289_v25 = vpop.eup %3288 }
 0x2a5   :  { %v3291_v22 = vpop.eup %3290  ;;  %v815_v29 = vmul.f32 %v3289_v25, %v3287_v23 }
 0x2a6   :  { %v814_v33 = vmul.f32 %v3291_v22, %v812_v28  ;;  %v61_v22 = vpop.permute.xlu1 %60 }
 0x2a7   :  { %v99_v32 = vmul.f32 %v3608_v54, %v61_v22 }
 0x2a8   :  { %v3674_v34 = vadd.f32 %v815_v29, %v814_v33  ;;  %v76_v29 = vmul.f32 %v3495_v17, %v61_v22 }
 0x2aa   :  { %3294 = vtanh.f32 %v3674_v34  ;;  %v1138_v10 = vrot.slane %v3674_v34, 4  ;;  %v3750_v33 = vadd.f32 %v3500_v18, %v76_v29  ;;  %v3753_v34 = vadd.f32 %v3615_v56, %v99_v32 }
 0x2ac   :  { %v3293_v35 = vpop.eup %3292 }
 0x2b4   :  { %v3295_v36 = vpop.eup %3294 }
 0x2b5   :  { %v818_v37 = vmul.f32 %v3295_v36, %v3293_v35 }
 0x2b7   :  { %2849 = vmatmul.mubr.msk.f32.vlgmr.msra.gmra.mrb[8].mxu0 %vm177_vm1, %v818_v37  ;;  %2860 = vmatmul.mubr.msk.f32.vlgmr.msra.gmra.mrb[8].mxu1 %vm177_vm1, %v818_v37 }
 0x2b8   :  { %3133 = vmatpush3.bf16.msra.mxu0 %v3557_v45  ;;  %3139 = vmatpush3.bf16.msra.mxu1 %v3559_v46 }
 0x2b9   :  { %3134 = vmatprep.subr.bf16.mxu0 %v3401_v6  ;;  %3140 = vmatprep.subr.bf16.mxu1 %v3401_v6 }
 0x2ba   :  { %2870 = vmatprep.mubr.msk.f32.mxu0 %vm3402_vm0, %v3403_v14  ;;  %2881 = vmatprep.mubr.msk.f32.mxu1 %vm3402_vm0, %v3403_v14 }
 0x2bc   :  { %3136 = vmatpush3.bf16.msra.mxu0 %v3577_v52  ;;  %3142 = vmatpush3.bf16.msra.mxu1 %v3579_v53 }
 0x2bd   :  { %3143 = vmatprep.subr.bf16.mxu0 %v3401_v6  ;;  %3149 = vmatprep.subr.bf16.mxu1 %v3401_v6 }
 0x2bf   :  { %2871 = vmatmul.mubr.msk.f32.vlgmr.msra.gmra.mrb[10].mxu0 %vm177_vm1, %v818_v37  ;;  %2882 = vmatmul.mubr.msk.f32.vlgmr.msra.gmra.mrb[10].mxu1 %vm177_vm1, %v818_v37 }
 0x2c0   :  { %3145 = vmatpush3.bf16.msra.mxu0 %v3457_v7  ;;  %3151 = vmatpush3.bf16.msra.mxu1 %v3468_v11 }
 0x2c1   :  { %3146 = vmatprep.subr.bf16.mxu0 %v3401_v6  ;;  %3152 = vmatprep.subr.bf16.mxu1 %v3401_v6 }
 0x2c2   :  { %2892 = vmatprep.mubr.msk.f32.mxu0 %vm3402_vm0, %v3403_v14  ;;  %2903 = vmatprep.mubr.msk.f32.mxu1 %vm3402_vm0, %v3403_v14 }
 0x2c4   :  { %3148 = vmatpush3.bf16.msra.mxu0 %v3481_v15  ;;  %3154 = vmatpush3.bf16.msra.mxu1 %v3485_v16 }
 0x2c5   :  { %3155 = vmatprep.subr.bf16.mxu0 %v3401_v6  ;;  %3161 = vmatprep.subr.bf16.mxu1 %v3401_v6 }
 0x38a   :  { %v888_v31 = vpop.f32.mrb[8].mxu0  ;;  %v962_v40 = vpop.f32.mrb[8].mxu1 }
 0x38b   :  { %v893_v41 = vrot.slane %v888_v31, 4  ;;  %v967_v42 = vrot.slane %v962_v40, 4  ;;  %v2850_v38 = vpop.f32.mrb[9].mxu0  ;;  %v2861_v43 = vpop.f32.mrb[9].mxu1 }
 0x38c   :  { %v123_v38 = vmul.f32 %v3528_v27, %v61_v22 }
 0x38d   :  { %v895_v44 = vadd.f32 %v893_v41, %v3656_v47  ;;  %v969_v49 = vadd.f32 %v967_v42, %v3659_v48  ;;  %v147_v42 = vmul.f32 %v3505_v19, %v61_v22 }
 0x38f   :  { %v2574_v50 = vmul.f32 -1.442695, %v895_v44  ;;  %v2575_v51 = vmul.f32 -1.442695, %v969_v49  ;;  %v3760_v43 = vadd.f32 %v3519_v24, %v147_v42 }
 0x391   :  { %3296 = vpow2.f32 %v2574_v50 }
 0x392   :  { %3298 = vpow2.f32 %v2575_v51  ;;  %v1036_v55 = vpop.f32.mrb[10].mxu0  ;;  %v1110_v57 = vpop.f32.mrb[10].mxu1 }
 0x393   :  { %v1115_v58 = vrot.slane %v1110_v57, 4  ;;  %v2872_v59 = vpop.f32.mrb[11].mxu0  ;;  %v2883_v60 = vpop.f32.mrb[11].mxu1  ;;  %v1041_v61 = vrot.slane %v1036_v55, 4  ;;  %v3764_v57 = vadd.f32 %v3536_v30, %v123_v38 }
 0x395   :  { %v1117_v62 = vadd.f32 %v1115_v58, %v3666_v63  ;;  %v1043_v1 = vadd.f32 %v1041_v61, %v3670_v5 }
 0x397   :  { %v2576_v0 = vmul.f32 -1.442695, %v1117_v62 }
 0x399   :  { %3300 = vpow2.f32 %v2576_v0 }
 0x39a   :  { %3302 = vtanh.f32 %v1043_v1 }
 0x39b   :  { %v3297_v2 = vpop.eup %3296 }
 0x39c   :  { %v3299_v3 = vpop.eup %3298  ;;  %v1121_v47 = vadd.f32 1.0, %v3297_v2 }
 0x39d   :  { %v1127_v48 = vadd.f32 1.0, %v3299_v3 }
 0x39e   :  { %3304 = vrcp.f32 %v1121_v47 }
 0x39f   :  { %3306 = vrcp.f32 %v1127_v48 }
 0x3a3   :  { %v3301_v4 = vpop.eup %3300 }
 0x3a4   :  { %v3303_v8 = vpop.eup %3302  ;;  %v1134_v20 = vadd.f32 1.0, %v3301_v4 }
 0x3a6   :  { %3308 = vrcp.f32 %v1134_v20 }
 0x3a8   :  { %v3305_v9 = vpop.eup %3304 }
 0x3a9   :  { %v3307_v12 = vpop.eup %3306  ;;  %v1141_v13 = vmul.f32 %v3305_v9, %v3303_v8 }
 0x3aa   :  { %v1140_v63 = vmul.f32 %v3307_v12, %v1138_v10 }
 0x3ac   :  { %v3716_v21 = vadd.f32 %v1141_v13, %v1140_v63 }
 0x3ae   :  { %3310 = vtanh.f32 %v3716_v21  ;;  %v1453_v47 = vrot.slane %v3716_v21, 4 }
 0x3b0   :  { %v3309_v5 = vpop.eup %3308 }
 0x3b8   :  { %v3311_v23 = vpop.eup %3310 }
 0x3b9   :  { %v1144_v25 = vmul.f32 %v3311_v23, %v3309_v5 }
 0x3bb   :  { %v1146_v28 = vrot.slane %v1144_v25, 4 }
 0x3bd   :  { %2893 = vmatmul.mubr.msk.f32.vlgmr.msra.gmra.mrb[12].mxu0 %vm177_vm1, %v1146_v28  ;;  %2904 = vmatmul.mubr.msk.f32.vlgmr.msra.gmra.mrb[12].mxu1 %vm177_vm1, %v1146_v28 }
 0x3be   :  { %3157 = vmatpush3.bf16.msra.mxu0 %v3557_v45  ;;  %3163 = vmatpush3.bf16.msra.mxu1 %v3559_v46 }
 0x3bf   :  { %3158 = vmatprep.subr.bf16.mxu0 %v3401_v6  ;;  %3164 = vmatprep.subr.bf16.mxu1 %v3401_v6 }
 0x3c0   :  { %2914 = vmatprep.mubr.msk.f32.mxu0 %vm3402_vm0, %v3403_v14  ;;  %2925 = vmatprep.mubr.msk.f32.mxu1 %vm3402_vm0, %v3403_v14 }
 0x3c2   :  { %3160 = vmatpush3.bf16.msra.mxu0 %v3577_v52  ;;  %3166 = vmatpush3.bf16.msra.mxu1 %v3579_v53 }
 0x3c3   :  { %3167 = vmatprep.subr.bf16.mxu0 %v3401_v6  ;;  %3173 = vmatprep.subr.bf16.mxu1 %v3401_v6 }
 0x3c5   :  { %2915 = vmatmul.mubr.msk.f32.vlgmr.msra.gmra.mrb[14].mxu0 %vm177_vm1, %v1146_v28  ;;  %2926 = vmatmul.mubr.msk.f32.vlgmr.msra.gmra.mrb[14].mxu1 %vm177_vm1, %v1146_v28 }
 0x3c6   :  { %3169 = vmatpush3.bf16.msra.mxu0 %v3457_v7  ;;  %3175 = vmatpush3.bf16.msra.mxu1 %v3468_v11 }
 0x3c7   :  { %3170 = vmatprep.subr.bf16.mxu0 %v3401_v6  ;;  %3176 = vmatprep.subr.bf16.mxu1 %v3401_v6 }
 0x3c8   :  { %2936 = vmatprep.mubr.msk.f32.mxu0 %vm3402_vm0, %v3403_v14  ;;  %2947 = vmatprep.mubr.msk.f32.mxu1 %vm3402_vm0, %v3403_v14 }
 0x3ca   :  { %3172 = vmatpush3.bf16.msra.mxu0 %v3481_v15  ;;  %3178 = vmatpush3.bf16.msra.mxu1 %v3485_v16 }
 0x3cb   :  { %3179 = vmatprep.subr.bf16.mxu0 %v3401_v6  ;;  %3185 = vmatprep.subr.bf16.mxu1 %v3401_v6 }
 0x490   :  { %v1215_v35 = vpop.f32.mrb[12].mxu0  ;;  %v1286_v36 = vpop.f32.mrb[12].mxu1 }
 0x491   :  { %v1219_v37 = vadd.f32 %v1215_v35, %v3750_v33  ;;  %v1290_v26 = vadd.f32 %v1286_v36, %v3753_v34  ;;  %v2894_v39 = vpop.f32.mrb[13].mxu0  ;;  %v2905_v31 = vpop.f32.mrb[13].mxu1 }
 0x493   :  { %v2581_v40 = vmul.f32 -1.442695, %v1219_v37  ;;  %v2582_v41 = vmul.f32 -1.442695, %v1290_v26 }
 0x495   :  { %3312 = vpow2.f32 %v2581_v40 }
 0x496   :  { %3314 = vpow2.f32 %v2582_v41 }
 0x498   :  { %v1357_v44 = vpop.f32.mrb[14].mxu0  ;;  %v1428_v49 = vpop.f32.mrb[14].mxu1 }
 0x499   :  { %v1432_v50 = vadd.f32 %v1428_v49, %v3760_v43  ;;  %v2916_v51 = vpop.f32.mrb[15].mxu0  ;;  %v2927_v55 = vpop.f32.mrb[15].mxu1  ;;  %v1361_v59 = vadd.f32 %v1357_v44, %v3764_v57 }
 0x49b   :  { %v2583_v58 = vmul.f32 -1.442695, %v1432_v50 }
 0x49d   :  { %3316 = vpow2.f32 %v2583_v58 }
 0x49e   :  { %3318 = vtanh.f32 %v1361_v59 }
 0x49f   :  { %v3313_v60 = vpop.eup %3312 }
 0x4a0   :  { %v3315_v61 = vpop.eup %3314  ;;  %v1436_v62 = vadd.f32 1.0, %v3313_v60 }
 0x4a1   :  { %v1442_v0 = vadd.f32 1.0, %v3315_v61 }
 0x4a2   :  { %3320 = vrcp.f32 %v1436_v62 }
 0x4a3   :  { %3322 = vrcp.f32 %v1442_v0 }
 0x4a7   :  { %v3317_v1 = vpop.eup %3316 }
 0x4a8   :  { %v3319_v2 = vpop.eup %3318  ;;  %v1449_v8 = vadd.f32 1.0, %v3317_v1 }
 0x4aa   :  { %3324 = vrcp.f32 %v1449_v8 }
 0x4ac   :  { %v3321_v3 = vpop.eup %3320 }
 0x4ad   :  { %v3323_v48 = vpop.eup %3322  ;;  %v1456_v4 = vmul.f32 %v3321_v3, %v3319_v2 }
 0x4ae   :  { %v1455_v9 = vmul.f32 %v3323_v48, %v1453_v47 }
 0x4b0   :  { %v3768_v10 = vadd.f32 %v1456_v4, %v1455_v9 }
 0x4b2   :  { %3326 = vtanh.f32 %v3768_v10  ;;  %v1779_v58 = vrot.slane %v3768_v10, 4 }
 0x4b4   :  { %v3325_v12 = vpop.eup %3324 }
 0x4bc   :  { %v3327_v13 = vpop.eup %3326 }
 0x4bd   :  { %v1459_v20 = vmul.f32 %v3327_v13, %v3325_v12 }
 0x4bf   :  { %2937 = vmatmul.mubr.msk.f32.vlgmr.msra.gmra.mrb[16].mxu0 %vm177_vm1, %v1459_v20  ;;  %2948 = vmatmul.mubr.msk.f32.vlgmr.msra.gmra.mrb[16].mxu1 %vm177_vm1, %v1459_v20 }
 0x4c0   :  { %3181 = vmatpush3.bf16.msra.mxu0 %v3557_v45  ;;  %3187 = vmatpush3.bf16.msra.mxu1 %v3559_v46 }
 0x4c1   :  { %3182 = vmatprep.subr.bf16.mxu0 %v3401_v6  ;;  %3188 = vmatprep.subr.bf16.mxu1 %v3401_v6 }
 0x4c2   :  { %2958 = vmatprep.mubr.msk.f32.mxu0 %vm3402_vm0, %v3403_v14  ;;  %2969 = vmatprep.mubr.msk.f32.mxu1 %vm3402_vm0, %v3403_v14 }
 0x4c4   :  { %3184 = vmatpush3.bf16.msra.mxu0 %v3577_v52  ;;  %3190 = vmatpush3.bf16.msra.mxu1 %v3579_v53 }
 0x4c5   :  { %3191 = vmatprep.subr.bf16.mxu0 %v3401_v6  ;;  %3197 = vmatprep.subr.bf16.mxu1 %v3401_v6 }
 0x4c7   :  { %2959 = vmatmul.mubr.msk.f32.vlgmr.msra.gmra.mrb[18].mxu0 %vm177_vm1, %v1459_v20  ;;  %2970 = vmatmul.mubr.msk.f32.vlgmr.msra.gmra.mrb[18].mxu1 %vm177_vm1, %v1459_v20 }
 0x4c8   :  { %3193 = vmatpush3.bf16.msra.mxu0 %v3457_v7  ;;  %3199 = vmatpush3.bf16.msra.mxu1 %v3468_v11 }
 0x4c9   :  { %3194 = vmatprep.subr.bf16.mxu0 %v3401_v6  ;;  %3200 = vmatprep.subr.bf16.mxu1 %v3401_v6 }
 0x4ca   :  { %2980 = vmatprep.mubr.msk.f32.mxu0 %vm3402_vm0, %v3403_v14  ;;  %2991 = vmatprep.mubr.msk.f32.mxu1 %vm3402_vm0, %v3403_v14 }
 0x4cc   :  { %3196 = vmatpush3.bf16.msra.mxu0 %v3481_v15  ;;  %3202 = vmatpush3.bf16.msra.mxu1 %v3485_v16 }
 0x4cd   :  { %3203 = vmatprep.subr.bf16.mxu0 %v3401_v6  ;;  %3209 = vmatprep.subr.bf16.mxu1 %v3401_v6 }
 0x592   :  { %v1529_v63 = vpop.f32.mrb[16].mxu0  ;;  %v1603_v21 = vpop.f32.mrb[16].mxu1 }
 0x593   :  { %v1534_v5 = vrot.slane %v1529_v63, 4  ;;  %v1608_v23 = vrot.slane %v1603_v21, 4  ;;  %v2938_v25 = vpop.f32.mrb[17].mxu0  ;;  %v2949_v28 = vpop.f32.mrb[17].mxu1 }
 0x595   :  { %v1536_v22 = vadd.f32 %v1534_v5, %v3750_v33  ;;  %v1610_v29 = vadd.f32 %v1608_v23, %v3753_v34 }
 0x597   :  { %v2588_v32 = vmul.f32 -1.442695, %v1536_v22  ;;  %v2589_v35 = vmul.f32 -1.442695, %v1610_v29 }
 0x599   :  { %3328 = vpow2.f32 %v2588_v32 }
 0x59a   :  { %3330 = vpow2.f32 %v2589_v35  ;;  %v1677_v36 = vpop.f32.mrb[18].mxu0  ;;  %v1751_v37 = vpop.f32.mrb[18].mxu1 }
 0x59b   :  { %v1756_v26 = vrot.slane %v1751_v37, 4  ;;  %v2960_v39 = vpop.f32.mrb[19].mxu0  ;;  %v2971_v31 = vpop.f32.mrb[19].mxu1  ;;  %v1682_v40 = vrot.slane %v1677_v36, 4 }
 0x59d   :  { %v1758_v41 = vadd.f32 %v1756_v26, %v3760_v43  ;;  %v1684_v38 = vadd.f32 %v1682_v40, %v3764_v57 }
 0x59f   :  { %v2590_v42 = vmul.f32 -1.442695, %v1758_v41 }
 0x5a1   :  { %3332 = vpow2.f32 %v2590_v42 }
 0x5a2   :  { %3334 = vtanh.f32 %v1684_v38  ;;  %v2430_v38 = vld [vmem:[%s3914_s4 + $0x18] sm:$0xff] }
 0x5a3   :  { %v3329_v44 = vpop.eup %3328 }
 0x5a4   :  { %v3331_v49 = vpop.eup %3330  ;;  %v1762_v33 = vadd.f32 1.0, %v3329_v44 }
 0x5a5   :  { %v1768_v34 = vadd.f32 1.0, %v3331_v49 }
 0x5a6   :  { %3336 = vrcp.f32 %v1762_v33 }
 0x5a7   :  { %3338 = vrcp.f32 %v1768_v34 }
 0x5ab   :  { %v3333_v50 = vpop.eup %3332 }
 0x5ac   :  { %v3335_v51 = vpop.eup %3334  ;;  %v1775_v61 = vadd.f32 1.0, %v3333_v50 }
 0x5ae   :  { %3340 = vrcp.f32 %v1775_v61 }
 0x5b0   :  { %v3337_v55 = vpop.eup %3336 }
 0x5b1   :  { %v3339_v59 = vpop.eup %3338  ;;  %v1782_v60 = vmul.f32 %v3337_v55, %v3335_v51 }
 0x5b2   :  { %v1781_v43 = vmul.f32 %v3339_v59, %v1779_v58 }
 0x5b4   :  { %v3804_v62 = vadd.f32 %v1782_v60, %v1781_v43 }
 0x5b6   :  { %3342 = vtanh.f32 %v3804_v62  ;;  %v2094_v36 = vrot.slane %v3804_v62, 4 }
 0x5b8   :  { %v3341_v57 = vpop.eup %3340 }
 0x5c0   :  { %v3343_v0 = vpop.eup %3342 }
 0x5c1   :  { %v1785_v1 = vmul.f32 %v3343_v0, %v3341_v57 }
 0x5c3   :  { %v1787_v2 = vrot.slane %v1785_v1, 4 }
 0x5c5   :  { %2981 = vmatmul.mubr.msk.f32.vlgmr.msra.gmra.mrb[20].mxu0 %vm177_vm1, %v1787_v2  ;;  %2992 = vmatmul.mubr.msk.f32.vlgmr.msra.gmra.mrb[20].mxu1 %vm177_vm1, %v1787_v2 }
 0x5c6   :  { %3205 = vmatpush3.bf16.msra.mxu0 %v3557_v45  ;;  %3211 = vmatpush3.bf16.msra.mxu1 %v3559_v46 }
 0x5c7   :  { %3206 = vmatprep.subr.bf16.mxu0 %v3401_v6  ;;  %3212 = vmatprep.subr.bf16.mxu1 %v3401_v6 }
 0x5c8   :  { %3002 = vmatprep.mubr.msk.f32.mxu0 %vm3402_vm0, %v3403_v14  ;;  %3013 = vmatprep.mubr.msk.f32.mxu1 %vm3402_vm0, %v3403_v14 }
 0x5ca   :  { %3208 = vmatpush3.bf16.msra.mxu0 %v3577_v52  ;;  %3214 = vmatpush3.bf16.msra.mxu1 %v3579_v53 }
 0x5cb   :  { %3215 = vmatprep.subr.bf16.mxu0 %v3401_v6  ;;  %3221 = vmatprep.subr.bf16.mxu1 %v3401_v6 }
 0x5cd   :  { %3003 = vmatmul.mubr.msk.f32.vlgmr.msra.gmra.mrb[22].mxu0 %vm177_vm1, %v1787_v2  ;;  %3014 = vmatmul.mubr.msk.f32.vlgmr.msra.gmra.mrb[22].mxu1 %vm177_vm1, %v1787_v2 }
 0x5ce   :  { %3217 = vmatpush3.bf16.msra.mxu0 %v3457_v7  ;;  %3223 = vmatpush3.bf16.msra.mxu1 %v3468_v11  ;;  %v66_v7 = vpop.permute.xlu1 %65 }
 0x5cf   :  { %3218 = vmatprep.subr.bf16.mxu0 %v3401_v6  ;;  %3224 = vmatprep.subr.bf16.mxu1 %v3401_v6  ;;  %v77_v11 = vmul.f32 %v3495_v17, %v66_v7  ;;  %v100_v3 = vmul.f32 %v3608_v54, %v66_v7  ;;  %v148_v12 = vmul.f32 %v3505_v19, %v66_v7 }
 0x5d0   :  { %3024 = vmatprep.mubr.msk.f32.mxu0 %vm3402_vm0, %v3403_v14  ;;  %3035 = vmatprep.mubr.msk.f32.mxu1 %vm3402_vm0, %v3403_v14 }
 0x5d1   :  { %v3838_v47 = vadd.f32 %v3500_v18, %v77_v11  ;;  %v3841_v48 = vadd.f32 %v3615_v56, %v100_v3  ;;  %v124_v18 = vmul.f32 %v3528_v27, %v66_v7  ;;  %v3848_v54 = vadd.f32 %v3519_v24, %v148_v12 }
 0x5d2   :  { %3220 = vmatpush3.bf16.msra.mxu0 %v3481_v15  ;;  %3226 = vmatpush3.bf16.msra.mxu1 %v3485_v16 }
 0x5d3   :  { %3227 = vmatprep.subr.bf16.mxu0 %v3401_v6  ;;  %3233 = vmatprep.subr.bf16.mxu1 %v3401_v6  ;;  %v3852_v23 = vadd.f32 %v3536_v30, %v124_v18 }
 0x698   :  { %v1856_v4 = vpop.f32.mrb[20].mxu0  ;;  %v1927_v8 = vpop.f32.mrb[20].mxu1 }
 0x699   :  { %v1860_v15 = vadd.f32 %v1856_v4, %v3838_v47  ;;  %v1931_v16 = vadd.f32 %v1927_v8, %v3841_v48  ;;  %v2982_v9 = vpop.f32.mrb[21].mxu0  ;;  %v2993_v10 = vpop.f32.mrb[21].mxu1 }
 0x69b   :  { %v2595_v13 = vmul.f32 -1.442695, %v1860_v15  ;;  %v2596_v17 = vmul.f32 -1.442695, %v1931_v16 }
 0x69d   :  { %3344 = vpow2.f32 %v2595_v13 }
 0x69e   :  { %3346 = vpow2.f32 %v2596_v17 }
 0x6a0   :  { %v1998_v56 = vpop.f32.mrb[22].mxu0  ;;  %v2069_v20 = vpop.f32.mrb[22].mxu1 }
 0x6a1   :  { %v2073_v63 = vadd.f32 %v2069_v20, %v3848_v54  ;;  %v3004_v21 = vpop.f32.mrb[23].mxu0  ;;  %v3015_v5 = vpop.f32.mrb[23].mxu1  ;;  %v2002_v19 = vadd.f32 %v1998_v56, %v3852_v23 }
 0x6a3   :  { %v2597_v25 = vmul.f32 -1.442695, %v2073_v63  ;;  %v2605_v63 = vld [vmem:[%s3915_s5] ss:$0 sm:$0xff] }
 0x6a5   :  { %3348 = vpow2.f32 %v2597_v25 }
 0x6a6   :  { %3350 = vtanh.f32 %v2002_v19 }
 0x6a7   :  { %v3345_v28 = vpop.eup %3344 }
 0x6a8   :  { %v3347_v22 = vpop.eup %3346  ;;  %v2077_v29 = vadd.f32 1.0, %v3345_v28 }
 0x6a9   :  { %v2083_v27 = vadd.f32 1.0, %v3347_v22 }
 0x6aa   :  { %3352 = vrcp.f32 %v2077_v29 }
 0x6ab   :  { %3354 = vrcp.f32 %v2083_v27 }
 0x6af   :  { %v3349_v24 = vpop.eup %3348 }
 0x6b0   :  { %v3351_v32 = vpop.eup %3350  ;;  %v2090_v30 = vadd.f32 1.0, %v3349_v24 }
 0x6b2   :  { %3356 = vrcp.f32 %v2090_v30 }
 0x6b4   :  { %v3353_v35 = vpop.eup %3352 }
 0x6b5   :  { %v3355_v37 = vpop.eup %3354  ;;  %v2097_v26 = vmul.f32 %v3353_v35, %v3351_v32 }
 0x6b6   :  { %v2096_v39 = vmul.f32 %v3355_v37, %v2094_v36 }
 0x6b8   :  { %v3856_v31 = vadd.f32 %v2097_v26, %v2096_v39 }
 0x6ba   :  { %3358 = vtanh.f32 %v3856_v31  ;;  %v2420_v16 = vrot.slane %v3856_v31, 4 }
 0x6bc   :  { %v3357_v40 = vpop.eup %3356 }
 0x6c4   :  { %v3359_v41 = vpop.eup %3358 }
 0x6c5   :  { %v2100_v42 = vmul.f32 %v3359_v41, %v3357_v40 }
 0x6c7   :  { %3025 = vmatmul.mubr.msk.f32.vlgmr.msra.gmra.mrb[24].mxu0 %vm177_vm1, %v2100_v42  ;;  %3036 = vmatmul.mubr.msk.f32.vlgmr.msra.gmra.mrb[24].mxu1 %vm177_vm1, %v2100_v42 }
 0x6c8   :  { %3229 = vmatpush3.bf16.msra.mxu0 %v3557_v45  ;;  %3235 = vmatpush3.bf16.msra.mxu1 %v3559_v46  ;;  %v2427_v45 = vld [vmem:[%s3914_s4] sm:$0xff]  ;;  %v2428_v46 = vld [vmem:[%s3914_s4 + $0x8] sm:$0xff] }
 0x6c9   :  { %3230 = vmatprep.subr.bf16.mxu0 %v3401_v6  ;;  %3236 = vmatprep.subr.bf16.mxu1 %v3401_v6 }
 0x6ca   :  { %3046 = vmatprep.mubr.msk.f32.mxu0 %vm3402_vm0, %v3403_v14  ;;  %3057 = vmatprep.mubr.msk.f32.mxu1 %vm3402_vm0, %v3403_v14 }
 0x6cc   :  { %3232 = vmatpush3.bf16.msra.mxu0 %v3577_v52  ;;  %3238 = vmatpush3.bf16.msra.mxu1 %v3579_v53  ;;  %v2429_v52 = vld [vmem:[%s3914_s4 + $0x10] sm:$0xff]  ;;  %v3240_v53 = vpack.c.bf16 %v2428_v46, %v2427_v45 }
 0x6cd   :  { %3239 = vmatprep.subr.bf16.mxu0 %v3401_v6  ;;  %v3243_v44 = vpack.c.bf16 %v2430_v38, %v2429_v52 }
 0x6cf   :  { %3047 = vmatmul.mubr.msk.f32.vlgmr.msra.gmra.mrb[26].mxu0 %vm177_vm1, %v2100_v42  ;;  %3058 = vmatmul.mubr.msk.f32.vlgmr.msra.gmra.mrb[26].mxu1 %vm177_vm1, %v2100_v42 }
 0x6d0   :  { %3068 = vmatprep.mubr.msk.f32.mxu0 %vm3402_vm0, %v3403_v14  ;;  %3241 = vmatpush3.bf16.msra.mxu0 %v3240_v53 }
 0x6d1   :  { %3242 = vmatprep.subr.bf16.mxu0 %v3401_v6 }
 0x6d4   :  { %3244 = vmatpush3.bf16.msra.mxu0 %v3243_v44 }
 0x79a   :  { %v2170_v14 = vpop.f32.mrb[24].mxu0  ;;  %v2244_v49 = vpop.f32.mrb[24].mxu1 }
 0x79b   :  { %v2175_v33 = vrot.slane %v2170_v14, 4  ;;  %v2249_v34 = vrot.slane %v2244_v49, 4  ;;  %v3026_v50 = vpop.f32.mrb[25].mxu0  ;;  %v3037_v51 = vpop.f32.mrb[25].mxu1 }
 0x79d   :  { %v2177_v55 = vadd.f32 %v2175_v33, %v3838_v47  ;;  %v2251_v58 = vadd.f32 %v2249_v34, %v3841_v48 }
 0x79f   :  { %v2602_v59 = vmul.f32 -1.442695, %v2177_v55  ;;  %v2603_v60 = vmul.f32 -1.442695, %v2251_v58 }
 0x7a1   :  { %3360 = vpow2.f32 %v2602_v59 }
 0x7a2   :  { %3362 = vpow2.f32 %v2603_v60  ;;  %v2318_v61 = vpop.f32.mrb[26].mxu0  ;;  %v2392_v43 = vpop.f32.mrb[26].mxu1 }
 0x7a3   :  { %v2397_v62 = vrot.slane %v2392_v43, 4  ;;  %v3048_v57 = vpop.f32.mrb[27].mxu0  ;;  %v3059_v6 = vpop.f32.mrb[27].mxu1  ;;  %v2323_v0 = vrot.slane %v2318_v61, 4 }
 0x7a5   :  { %v2399_v1 = vadd.f32 %v2397_v62, %v3848_v54  ;;  %v2325_v7 = vadd.f32 %v2323_v0, %v3852_v23 }
 0x7a7   :  { %v2604_v2 = vmul.f32 -1.442695, %v2399_v1 }
 0x7a9   :  { %3364 = vpow2.f32 %v2604_v2 }
 0x7aa   :  { %3366 = vtanh.f32 %v2325_v7 }
 0x7ab   :  { %v3361_v11 = vpop.eup %3360 }
 0x7ac   :  { %v3363_v3 = vpop.eup %3362  ;;  %v2403_v47 = vadd.f32 1.0, %v3361_v11 }
 0x7ad   :  { %v2409_v48 = vadd.f32 1.0, %v3363_v3 }
 0x7ae   :  { %3368 = vrcp.f32 %v2403_v47 }
 0x7af   :  { %3370 = vrcp.f32 %v2409_v48 }
 0x7b3   :  { %v3365_v4 = vpop.eup %3364 }
 0x7b4   :  { %v3367_v8 = vpop.eup %3366  ;;  %v2416_v12 = vadd.f32 1.0, %v3365_v4 }
 0x7b6   :  { %3372 = vrcp.f32 %v2416_v12 }
 0x7b8   :  { %v3369_v15 = vpop.eup %3368 }
 0x7b9   :  { %v3371_v9 = vpop.eup %3370  ;;  %v2423_v10 = vmul.f32 %v3369_v15, %v3367_v8 }
 0x7ba   :  { %v2422_v13 = vmul.f32 %v3371_v9, %v2420_v16 }
 0x7bc   :  { %v2424_v17 = vadd.f32 %v2423_v10, %v2422_v13 }
 0x7be   :  { %3374 = vtanh.f32 %v2424_v17 }
 0x7c0   :  { %v3373_v18 = vpop.eup %3372 }
 0x7c8   :  { %v3375_v54 = vpop.eup %3374 }
 0x7c9   :  { %v2426_v56 = vmul.f32 %v3375_v54, %v3373_v18 }
 0x7cb   :  { %v2439_v20 = vrot.slane %v2426_v56, 4 }
 0x7cd   :  { %3069 = vmatmul.mubr.msk.f32.vlgmr.msra.gmra.mrb[28].mxu0 %vm177_vm1, %v2439_v20 }
 0x8a0   :  { %v2508_v21 = vpop.f32.mrb[28].mxu0 }
 0x8a1   :  { %v2509_v5 = vadd.f32 %v2605_v63, %v2508_v21  ;;  %v3070_v23 = vpop.f32.mrb[29].mxu0 }
 0x8a3   :  { %2513 = vst.msk [vmem:[#allocation2] sm:$0xf] %vm2512_vm2, %v2509_v5 }
 0x8a4   :  { %3387 = shalt.err (!%p3384_p4)
}
 0x8a5   :  { %s3388_s15 = scalar_lea.hbm %s3916_s6, 64 }
 0x8a6   :  { %p3389_p5 = scmp.ne.s32.totalorder %s3916_s6, %s3388_s15  ;;  %p3392_p6 = scmp.lt.u32.totalorder %s3388_s15, %s3916_s6 }
 0x8a8   :  { %p3394_p7 = pnand %p3392_p6, %p3389_p5 }
 0x8aa   :  { %3397 = shalt.err (!%p3394_p7)
}
 0x8ab   :  { %2523 = dma.vmem_to_hbm [thread:$0]  %s2521_s11, 64, %s3916_s6, [#allocation3]  }
 0x8ac   :  { %3398 = dma.done.wait [#allocation3], 64  }
 0x8ad   :  { %3399 = vsyncadd [#allocation3], 4294967232 }
 0x8ae   :  { %2527 = vsyncpa [#allocation3], 1 }

</bundles_post_ra>
